<compile_context>
chip_gen: v7x
topology: tpu7x:2x2x1
jax: 0.10.0
libtpu: 0.0.40
codegen_flags: <defaults>
</compile_context>

<pallas_src>
import jax
import jax.numpy as jnp
from jax.experimental import pallas as pl
from jax.experimental.pallas import tpu as pltpu

# ----------------- synthetic BERT config (small) -----------------
HIDDEN = 32
HEADS = 2
HEAD_DIM = HIDDEN // HEADS
INTER = 64
LAYERS = 2
VOCAB = 100
MAX_POS = 16
NUM_CLASSES = 3
LN_EPS = 1e-12
BATCH = 2
SEQ = 8


# ----------------- in-kernel helpers (fp32 math, bf16 MXU inputs) -----------------
def _ln_f32(x, g, b):
    mean = jnp.mean(x, axis=-1, keepdims=True)
    var = jnp.mean(jnp.square(x - mean), axis=-1, keepdims=True)
    return (x - mean) * jax.lax.rsqrt(var + jnp.float32(LN_EPS)) * g + b


def _mm(x_f32, w_bf16):
    # x: fp32 activations, w: bf16 [in, out] (pre-transposed, so no in-kernel w.T);
    # MXU consumes bf16 operands, accumulates in fp32.
    return jnp.dot(x_f32.astype(jnp.bfloat16), w_bf16,
                   preferred_element_type=jnp.float32)


def _gelu_exact(x):
    return 0.5 * x * (1.0 + jax.lax.erf(x * jnp.float32(0.7071067811865476)))


# ----------------- fused encoder kernel: one grid step == one BERT layer -----------------
def _encoder_kernel(x_ref, mask_ref, emb_g_ref, emb_b_ref,
                    qkv_w_ref, qkv_b_ref, o_w_ref, o_b_ref,
                    ln1_g_ref, ln1_b_ref, i_w_ref, i_b_ref,
                    f_w_ref, f_b_ref, ln2_g_ref, ln2_b_ref,
                    out_ref, h_sc):
    layer = pl.program_id(0)

    @pl.when(layer == 0)
    def _():
        # embedding LayerNorm (embedding dropout = identity at inference)
        h_sc[...] = _ln_f32(x_ref[...].astype(jnp.float32),
                            emb_g_ref[...], emb_b_ref[...])

    h = h_sc[...]                                               # (B*S, H) fp32, VMEM-resident

    # ---- self-attention: fused QKV projection (one MXU pass over h) ----
    qkv = _mm(h, qkv_w_ref[0]) + qkv_b_ref[0]                   # (B*S, 3H) fp32
    bias = (1.0 - mask_ref[...]) * jnp.float32(-10000.0)        # (B, S), built in-kernel
    scale = jnp.float32(1.0 / (HEAD_DIM ** 0.5))

    ctx_rows = []
    for b in range(BATCH):                                      # tiny static unroll (B*HEADS=4)
        bias_b = bias[b:b + 1, :]                               # (1, S) key-axis bias
        r0, r1 = b * SEQ, (b + 1) * SEQ
        head_blocks = []
        for hh in range(HEADS):
            c = hh * HEAD_DIM
            q = qkv[r0:r1, c:c + HEAD_DIM]
            k = qkv[r0:r1, HIDDEN + c:HIDDEN + c + HEAD_DIM]
            v = qkv[r0:r1, 2 * HIDDEN + c:2 * HIDDEN + c + HEAD_DIM]
            # q @ k.T via contracting-dim swap (no explicit transpose op)
            s = jax.lax.dot_general(
                q.astype(jnp.bfloat16), k.astype(jnp.bfloat16),
                dimension_numbers=(((1,), (1,)), ((), ())),
                preferred_element_type=jnp.float32) * scale
            s = s + bias_b
            m = jnp.max(s, axis=-1, keepdims=True)
            p = jnp.exp(s - m)
            denom = jnp.sum(p, axis=-1, keepdims=True)
            p = p * pl.reciprocal(denom, approx=True)           # divide -> EUP slot
            head_blocks.append(
                jnp.dot(p.astype(jnp.bfloat16), v.astype(jnp.bfloat16),
                        preferred_element_type=jnp.float32))    # (S, HEAD_DIM)
        ctx_rows.append(jnp.concatenate(head_blocks, axis=-1))  # (S, H)
    ctx = jnp.concatenate(ctx_rows, axis=0)                     # (B*S, H)

    attn_out = _mm(ctx, o_w_ref[0]) + o_b_ref[0]
    h1 = _ln_f32(attn_out + h, ln1_g_ref[0], ln1_b_ref[0])      # residual fused into LN

    # ---- FFN (up + exact GELU + down), residual fused into LN ----
    ff = _gelu_exact(_mm(h1, i_w_ref[0]) + i_b_ref[0])
    ff = _mm(ff, f_w_ref[0]) + f_b_ref[0]
    h2 = _ln_f32(ff + h1, ln2_g_ref[0], ln2_b_ref[0])

    h_sc[...] = h2
    out_ref[...] = h2


def encoder_forward(x_emb, mask_f32, enc_w):
    BS = BATCH * SEQ

    def full(shape):
        return pl.BlockSpec(shape, lambda l: (0,) * len(shape))

    def per_layer(shape):
        return pl.BlockSpec((1,) + shape, lambda l: (l, 0, 0))

    in_specs = [
        full((BS, HIDDEN)),                 # x_emb
        full((BATCH, SEQ)),                 # attention mask
        full((1, HIDDEN)),                  # emb_ln_g
        full((1, HIDDEN)),                  # emb_ln_b
        per_layer((HIDDEN, 3 * HIDDEN)),    # qkv_w (bf16, [in, 3*out])
        per_layer((1, 3 * HIDDEN)),         # qkv_b
        per_layer((HIDDEN, HIDDEN)),        # o_w
        per_layer((1, HIDDEN)),             # o_b
        per_layer((1, HIDDEN)),             # ln1_g
        per_layer((1, HIDDEN)),             # ln1_b
        per_layer((HIDDEN, INTER)),         # i_w
        per_layer((1, INTER)),              # i_b
        per_layer((INTER, HIDDEN)),         # f_w
        per_layer((1, HIDDEN)),             # f_b
        per_layer((1, HIDDEN)),             # ln2_g
        per_layer((1, HIDDEN)),             # ln2_b
    ]
    return pl.pallas_call(
        _encoder_kernel,
        grid_spec=pltpu.PrefetchScalarGridSpec(
            num_scalar_prefetch=0,
            grid=(LAYERS,),
            in_specs=in_specs,
            out_specs=full((BS, HIDDEN)),
            scratch_shapes=[pltpu.VMEM((BS, HIDDEN), jnp.float32)]),
        out_shape=jax.ShapeDtypeStruct((BS, HIDDEN), jnp.float32),
        compiler_params=pltpu.CompilerParams(
            dimension_semantics=("arbitrary",)),   # layer axis carries a dependency
    )(x_emb, mask_f32,
      enc_w["emb_ln_g"], enc_w["emb_ln_b"],
      enc_w["qkv_w"], enc_w["qkv_b"], enc_w["o_w"], enc_w["o_b"],
      enc_w["ln1_g"], enc_w["ln1_b"], enc_w["i_w"], enc_w["i_b"],
      enc_w["f_w"], enc_w["f_b"], enc_w["ln2_g"], enc_w["ln2_b"])


# ----------------- fused pooler + classifier head kernel -----------------
def _head_kernel(cls_ref, pool_w_ref, pool_b_ref, fc_w_ref, fc_b_ref, o_ref):
    cls = cls_ref[...].astype(jnp.float32)
    pooled = jnp.tanh(_mm(cls, pool_w_ref[...]) + pool_b_ref[...])
    # self.dropout(pooled_output), p=0.1 -> identity in eval mode
    o_ref[...] = _mm(pooled, fc_w_ref[...]) + fc_b_ref[...]


def head_forward(cls, head_w):
    def full(shape):
        return pl.BlockSpec(shape, lambda i: (0,) * len(shape))

    return pl.pallas_call(
        _head_kernel,
        grid=(1,),
        in_specs=[full((BATCH, HIDDEN)),
                  full((HIDDEN, HIDDEN)), full((1, HIDDEN)),
                  full((HIDDEN, NUM_CLASSES)), full((1, NUM_CLASSES))],
        out_specs=full((BATCH, NUM_CLASSES)),
        out_shape=jax.ShapeDtypeStruct((BATCH, NUM_CLASSES), jnp.float32),
    )(cls, head_w["pool_w"], head_w["pool_b"], head_w["fc_w"], head_w["fc_b"])


# ----------------- parameter init (deterministic, PyTorch nn.Linear convention W:[out,in]) ---
def init_params(key):
    keys = iter(jax.random.split(key, 256))

    def nrm(shape):
        return 0.02 * jax.random.normal(next(keys), shape, dtype=jnp.float32)

    params = {
        "word_emb": nrm((VOCAB, HIDDEN)),
        "pos_emb": nrm((MAX_POS, HIDDEN)),
        "type_emb": nrm((2, HIDDEN)),
        "emb_ln_g": jnp.ones((HIDDEN,), jnp.float32),
        "emb_ln_b": jnp.zeros((HIDDEN,), jnp.float32),
        "layers": [],
        "pool_w": nrm((HIDDEN, HIDDEN)),
        "pool_b": jnp.zeros((HIDDEN,), jnp.float32),
        "fc_w": nrm((NUM_CLASSES, HIDDEN)),
        "fc_b": jnp.zeros((NUM_CLASSES,), jnp.float32),
    }
    for _ in range(LAYERS):
        params["layers"].append(
            {
                "q_w": nrm((HIDDEN, HIDDEN)), "q_b": jnp.zeros((HIDDEN,), jnp.float32),
                "k_w": nrm((HIDDEN, HIDDEN)), "k_b": jnp.zeros((HIDDEN,), jnp.float32),
                "v_w": nrm((HIDDEN, HIDDEN)), "v_b": jnp.zeros((HIDDEN,), jnp.float32),
                "o_w": nrm((HIDDEN, HIDDEN)), "o_b": jnp.zeros((HIDDEN,), jnp.float32),
                "ln1_g": jnp.ones((HIDDEN,), jnp.float32),
                "ln1_b": jnp.zeros((HIDDEN,), jnp.float32),
                "i_w": nrm((INTER, HIDDEN)), "i_b": jnp.zeros((INTER,), jnp.float32),
                "f_w": nrm((HIDDEN, INTER)), "f_b": jnp.zeros((HIDDEN,), jnp.float32),
                "ln2_g": jnp.ones((HIDDEN,), jnp.float32),
                "ln2_b": jnp.zeros((HIDDEN,), jnp.float32),
            }
        )
    return params


def prepare_weights(params):
    """Pre-transpose matmul weights to [in,out], cast them to bf16, fuse QKV, stack layers."""
    def t_bf16(w):
        return w.T.astype(jnp.bfloat16)

    def stack(fn):
        return jnp.stack([fn(l) for l in params["layers"]], axis=0)

    enc = {
        "emb_ln_g": params["emb_ln_g"].reshape(1, HIDDEN),
        "emb_ln_b": params["emb_ln_b"].reshape(1, HIDDEN),
        "qkv_w": stack(lambda l: t_bf16(
            jnp.concatenate([l["q_w"], l["k_w"], l["v_w"]], axis=0))),     # (L, H, 3H)
        "qkv_b": stack(lambda l: jnp.concatenate(
            [l["q_b"], l["k_b"], l["v_b"]], axis=0).reshape(1, 3 * HIDDEN)),
        "o_w": stack(lambda l: t_bf16(l["o_w"])),
        "o_b": stack(lambda l: l["o_b"].reshape(1, HIDDEN)),
        "ln1_g": stack(lambda l: l["ln1_g"].reshape(1, HIDDEN)),
        "ln1_b": stack(lambda l: l["ln1_b"].reshape(1, HIDDEN)),
        "i_w": stack(lambda l: t_bf16(l["i_w"])),
        "i_b": stack(lambda l: l["i_b"].reshape(1, INTER)),
        "f_w": stack(lambda l: t_bf16(l["f_w"])),
        "f_b": stack(lambda l: l["f_b"].reshape(1, HIDDEN)),
        "ln2_g": stack(lambda l: l["ln2_g"].reshape(1, HIDDEN)),
        "ln2_b": stack(lambda l: l["ln2_b"].reshape(1, HIDDEN)),
    }
    head = {
        "pool_w": t_bf16(params["pool_w"]),
        "pool_b": params["pool_b"].reshape(1, HIDDEN),
        "fc_w": t_bf16(params["fc_w"]),
        "fc_b": params["fc_b"].reshape(1, NUM_CLASSES),
    }
    return enc, head


# ----------------- forward pass: gathers are glue in JAX, compute in 2 fused Pallas calls ----
def bert_classifier_forward(params, input_ids, attention_mask):
    B, S = input_ids.shape
    enc_w, head_w = prepare_weights(params)

    # embeddings: token + position + segment(=0) gathers (glue, plain JAX)
    emb = (params["word_emb"][input_ids]
           + params["pos_emb"][:S][None, :, :]
           + params["type_emb"][0][None, None, :])

    h = encoder_forward(emb.reshape(B * S, HIDDEN),
                        attention_mask.astype(jnp.float32), enc_w)
    cls = h.reshape(B, S, HIDDEN)[:, 0, :]          # [CLS] token (tiny slice, kept as glue)
    return head_forward(cls, head_w)


if __name__ == "__main__":
    key = jax.random.PRNGKey(0)
    pkey, ikey = jax.random.split(key)
    params = init_params(pkey)

    input_ids = jax.random.randint(ikey, (BATCH, SEQ), 0, VOCAB, dtype=jnp.int32)
    attention_mask = jnp.ones((BATCH, SEQ), dtype=jnp.int32).at[1, 6:].set(0)

    logits = bert_classifier_forward(params, input_ids, attention_mask)
    logits = jax.block_until_ready(logits)
    assert logits.shape == (BATCH, NUM_CLASSES)
    assert bool(jnp.all(jnp.isfinite(logits)))
    print("KERNEL_OK")
</pallas_src>

<mosaic_0001>
module attributes {stable_mosaic.version = 11 : i64} {
  func.func @_encoder_kernel(%arg0: i32, %arg1: memref<16x32xf32, #tpu.memory_space<vmem>>, %arg2: memref<2x8xf32, #tpu.memory_space<vmem>>, %arg3: memref<1x32xf32, #tpu.memory_space<vmem>>, %arg4: memref<1x32xf32, #tpu.memory_space<vmem>>, %arg5: memref<1x32x96xbf16, #tpu.memory_space<vmem>>, %arg6: memref<1x1x96xf32, #tpu.memory_space<vmem>>, %arg7: memref<1x32x32xbf16, #tpu.memory_space<vmem>>, %arg8: memref<1x1x32xf32, #tpu.memory_space<vmem>>, %arg9: memref<1x1x32xf32, #tpu.memory_space<vmem>>, %arg10: memref<1x1x32xf32, #tpu.memory_space<vmem>>, %arg11: memref<1x32x64xbf16, #tpu.memory_space<vmem>>, %arg12: memref<1x1x64xf32, #tpu.memory_space<vmem>>, %arg13: memref<1x64x32xbf16, #tpu.memory_space<vmem>>, %arg14: memref<1x1x32xf32, #tpu.memory_space<vmem>>, %arg15: memref<1x1x32xf32, #tpu.memory_space<vmem>>, %arg16: memref<1x1x32xf32, #tpu.memory_space<vmem>>, %arg17: memref<16x32xf32, #tpu.memory_space<vmem>>, %arg18: memref<16x32xf32, #tpu.memory_space<vmem>>) attributes {dimension_semantics = [#tpu.dimension_semantics<arbitrary>], iteration_bounds = array<i64: 2>, scalar_prefetch = 0 : i64, scratch_operands = 1 : i64, tpu.core_type = #tpu.core_type<tc>, window_params = [{pipeline_mode = #tpu.pipeline_mode<synchronous>, transform_indices = @transform_0, window_bounds = array<i64: 16, 32>}, {pipeline_mode = #tpu.pipeline_mode<synchronous>, transform_indices = @transform_1, window_bounds = array<i64: 2, 8>}, {pipeline_mode = #tpu.pipeline_mode<synchronous>, transform_indices = @transform_2, window_bounds = array<i64: 1, 32>}, {pipeline_mode = #tpu.pipeline_mode<synchronous>, transform_indices = @transform_3, window_bounds = array<i64: 1, 32>}, {transform_indices = @transform_4, window_bounds = array<i64: 1, 32, 96>}, {transform_indices = @transform_5, window_bounds = array<i64: 1, 1, 96>}, {transform_indices = @transform_6, window_bounds = array<i64: 1, 32, 32>}, {transform_indices = @transform_7, window_bounds = array<i64: 1, 1, 32>}, {transform_indices = @transform_8, window_bounds = array<i64: 1, 1, 32>}, {transform_indices = @transform_9, window_bounds = array<i64: 1, 1, 32>}, {transform_indices = @transform_10, window_bounds = array<i64: 1, 32, 64>}, {transform_indices = @transform_11, window_bounds = array<i64: 1, 1, 64>}, {transform_indices = @transform_12, window_bounds = array<i64: 1, 64, 32>}, {transform_indices = @transform_13, window_bounds = array<i64: 1, 1, 32>}, {transform_indices = @transform_14, window_bounds = array<i64: 1, 1, 32>}, {transform_indices = @transform_15, window_bounds = array<i64: 1, 1, 32>}, {pipeline_mode = #tpu.pipeline_mode<synchronous>, transform_indices = @transform_16, window_bounds = array<i64: 16, 32>}]} {
    %c0_i32 = arith.constant 0 : i32
    %0 = arith.cmpi eq, %arg0, %c0_i32 : i32
    %1 = arith.extui %0 : i1 to i32
    %c0_i32_0 = arith.constant 0 : i32
    %2 = arith.cmpi ne, %1, %c0_i32_0 : i32
    scf.if %2 {
      %c0_82 = arith.constant 0 : index
      %c0_83 = arith.constant 0 : index
      %202 = vector.load %arg1[%c0_82, %c0_83] : memref<16x32xf32, #tpu.memory_space<vmem>>, vector<16x32xf32>
      %c0_84 = arith.constant 0 : index
      %c0_85 = arith.constant 0 : index
      %203 = vector.load %arg3[%c0_84, %c0_85] : memref<1x32xf32, #tpu.memory_space<vmem>>, vector<1x32xf32>
      %c0_86 = arith.constant 0 : index
      %c0_87 = arith.constant 0 : index
      %204 = vector.load %arg4[%c0_86, %c0_87] : memref<1x32xf32, #tpu.memory_space<vmem>>, vector<1x32xf32>
      %cst_88 = arith.constant dense<0.000000e+00> : vector<16xf32>
      %205 = vector.multi_reduction <add>, %202, %cst_88 [1] : vector<16x32xf32> to vector<16xf32>
      %206 = vector.shape_cast %205 : vector<16xf32> to vector<16x1xf32>
      %cst_89 = arith.constant 3.200000e+01 : f32
      %207 = vector.broadcast %cst_89 : f32 to vector<16x1xf32>
      %208 = arith.divf %206, %207 : vector<16x1xf32>
      %209 = vector.broadcast %208 : vector<16x1xf32> to vector<16x32xf32>
      %210 = arith.subf %202, %209 : vector<16x32xf32>
      %211 = arith.mulf %210, %210 : vector<16x32xf32>
      %cst_90 = arith.constant dense<0.000000e+00> : vector<16xf32>
      %212 = vector.multi_reduction <add>, %211, %cst_90 [1] : vector<16x32xf32> to vector<16xf32>
      %213 = vector.shape_cast %212 : vector<16xf32> to vector<16x1xf32>
      %cst_91 = arith.constant 3.200000e+01 : f32
      %214 = vector.broadcast %cst_91 : f32 to vector<16x1xf32>
      %215 = arith.divf %213, %214 : vector<16x1xf32>
      %216 = vector.broadcast %208 : vector<16x1xf32> to vector<16x32xf32>
      %217 = arith.subf %202, %216 : vector<16x32xf32>
      %cst_92 = arith.constant 9.99999996E-13 : f32
      %218 = vector.broadcast %cst_92 : f32 to vector<16x1xf32>
      %219 = arith.addf %215, %218 : vector<16x1xf32>
      %220 = math.rsqrt %219 : vector<16x1xf32>
      %221 = vector.broadcast %220 : vector<16x1xf32> to vector<16x32xf32>
      %222 = arith.mulf %217, %221 : vector<16x32xf32>
      %223 = vector.broadcast %203 : vector<1x32xf32> to vector<16x32xf32>
      %224 = arith.mulf %222, %223 : vector<16x32xf32>
      %225 = vector.broadcast %204 : vector<1x32xf32> to vector<16x32xf32>
      %226 = arith.addf %224, %225 : vector<16x32xf32>
      %c0_93 = arith.constant 0 : index
      %c0_94 = arith.constant 0 : index
      %227 = vector.load %arg18[%c0_93, %c0_94] : memref<16x32xf32, #tpu.memory_space<vmem>>, vector<16x32xf32>
      tpu.vector_store %arg18[%c0_93, %c0_94], %226 {strides = array<i32>} : memref<16x32xf32, #tpu.memory_space<vmem>>, vector<16x32xf32>,
    } else {
    }
    %c0 = arith.constant 0 : index
    %c0_1 = arith.constant 0 : index
    %3 = vector.load %arg18[%c0, %c0_1] : memref<16x32xf32, #tpu.memory_space<vmem>>, vector<16x32xf32>
    %c0_2 = arith.constant 0 : index
    %c0_3 = arith.constant 0 : index
    %c0_4 = arith.constant 0 : index
    %4 = vector.load %arg5[%c0_2, %c0_3, %c0_4] : memref<1x32x96xbf16, #tpu.memory_space<vmem>>, vector<1x32x96xbf16>
    %5 = vector.shape_cast %4 : vector<1x32x96xbf16> to vector<32x96xbf16>
    %6 = arith.truncf %3 : vector<16x32xf32> to vector<16x32xbf16>
    %cst = arith.constant dense<0.000000e+00> : vector<16x96xf32>
    %7 = tpu.matmul %6, %5, %cst {dimension_numbers = #tpu.dot_dimension_numbers<[1], [0], [0], [1], [0, 0, 1, 1], [], []>} : vector<16x32xbf16>, vector<32x96xbf16>, vector<16x96xf32> -> vector<16x96xf32>
    %c0_5 = arith.constant 0 : index
    %c0_6 = arith.constant 0 : index
    %c0_7 = arith.constant 0 : index
    %8 = vector.load %arg6[%c0_5, %c0_6, %c0_7] : memref<1x1x96xf32, #tpu.memory_space<vmem>>, vector<1x1x96xf32>
    %9 = vector.shape_cast %8 : vector<1x1x96xf32> to vector<1x96xf32>
    %10 = vector.broadcast %9 : vector<1x96xf32> to vector<16x96xf32>
    %11 = arith.addf %7, %10 : vector<16x96xf32>
    %c0_8 = arith.constant 0 : index
    %c0_9 = arith.constant 0 : index
    %12 = vector.load %arg2[%c0_8, %c0_9] : memref<2x8xf32, #tpu.memory_space<vmem>>, vector<2x8xf32>
    %cst_10 = arith.constant 1.000000e+00 : f32
    %13 = vector.broadcast %cst_10 : f32 to vector<2x8xf32>
    %14 = arith.subf %13, %12 : vector<2x8xf32>
    %cst_11 = arith.constant -1.000000e+04 : f32
    %15 = vector.broadcast %cst_11 : f32 to vector<2x8xf32>
    %16 = arith.mulf %14, %15 : vector<2x8xf32>
    %17 = vector.extract_strided_slice %16 {offsets = [0, 0], sizes = [1, 8], strides = [1, 1]} : vector<2x8xf32> to vector<1x8xf32>
    %18 = vector.extract_strided_slice %11 {offsets = [0, 0], sizes = [8, 16], strides = [1, 1]} : vector<16x96xf32> to vector<8x16xf32>
    %19 = vector.extract_strided_slice %11 {offsets = [0, 32], sizes = [8, 16], strides = [1, 1]} : vector<16x96xf32> to vector<8x16xf32>
    %20 = vector.extract_strided_slice %11 {offsets = [0, 64], sizes = [8, 16], strides = [1, 1]} : vector<16x96xf32> to vector<8x16xf32>
    %21 = arith.truncf %18 : vector<8x16xf32> to vector<8x16xbf16>
    %22 = arith.truncf %19 : vector<8x16xf32> to vector<8x16xbf16>
    %cst_12 = arith.constant dense<0.000000e+00> : vector<8x8xf32>
    %23 = tpu.matmul %21, %22, %cst_12 {dimension_numbers = #tpu.dot_dimension_numbers<[1], [1], [0], [0], [0, 0, 1, 0], [], []>} : vector<8x16xbf16>, vector<8x16xbf16>, vector<8x8xf32> -> vector<8x8xf32>
    %cst_13 = arith.constant 2.500000e-01 : f32
    %24 = vector.broadcast %cst_13 : f32 to vector<8x8xf32>
    %25 = arith.mulf %23, %24 : vector<8x8xf32>
    %26 = vector.broadcast %17 : vector<1x8xf32> to vector<8x8xf32>
    %27 = arith.addf %25, %26 : vector<8x8xf32>
    %cst_14 = arith.constant dense<0xFF800000> : vector<8xf32>
    %28 = vector.multi_reduction <maximumf>, %27, %cst_14 [1] : vector<8x8xf32> to vector<8xf32>
    %29 = vector.shape_cast %28 : vector<8xf32> to vector<8x1xf32>
    %30 = vector.broadcast %29 : vector<8x1xf32> to vector<8x8xf32>
    %31 = arith.subf %27, %30 : vector<8x8xf32>
    %32 = math.exp %31 : vector<8x8xf32>
    %cst_15 = arith.constant dense<0.000000e+00> : vector<8xf32>
    %33 = vector.multi_reduction <add>, %32, %cst_15 [1] : vector<8x8xf32> to vector<8xf32>
    %34 = vector.shape_cast %33 : vector<8xf32> to vector<8x1xf32>
    %35 = tpu.reciprocal %34 {approx = true} : vector<8x1xf32> -> vector<8x1xf32>
    %36 = vector.broadcast %35 : vector<8x1xf32> to vector<8x8xf32>
    %37 = arith.mulf %32, %36 : vector<8x8xf32>
    %38 = arith.truncf %37 : vector<8x8xf32> to vector<8x8xbf16>
    %39 = arith.truncf %20 : vector<8x16xf32> to vector<8x16xbf16>
    %cst_16 = arith.constant dense<0.000000e+00> : vector<8x16xf32>
    %40 = tpu.matmul %38, %39, %cst_16 {dimension_numbers = #tpu.dot_dimension_numbers<[1], [0], [0], [1], [0, 0, 1, 1], [], []>} : vector<8x8xbf16>, vector<8x16xbf16>, vector<8x16xf32> -> vector<8x16xf32>
    %41 = vector.extract_strided_slice %11 {offsets = [0, 16], sizes = [8, 16], strides = [1, 1]} : vector<16x96xf32> to vector<8x16xf32>
    %42 = vector.extract_strided_slice %11 {offsets = [0, 48], sizes = [8, 16], strides = [1, 1]} : vector<16x96xf32> to vector<8x16xf32>
    %43 = vector.extract_strided_slice %11 {offsets = [0, 80], sizes = [8, 16], strides = [1, 1]} : vector<16x96xf32> to vector<8x16xf32>
    %44 = arith.truncf %41 : vector<8x16xf32> to vector<8x16xbf16>
    %45 = arith.truncf %42 : vector<8x16xf32> to vector<8x16xbf16>
    %cst_17 = arith.constant dense<0.000000e+00> : vector<8x8xf32>
    %46 = tpu.matmul %44, %45, %cst_17 {dimension_numbers = #tpu.dot_dimension_numbers<[1], [1], [0], [0], [0, 0, 1, 0], [], []>} : vector<8x16xbf16>, vector<8x16xbf16>, vector<8x8xf32> -> vector<8x8xf32>
    %cst_18 = arith.constant 2.500000e-01 : f32
    %47 = vector.broadcast %cst_18 : f32 to vector<8x8xf32>
    %48 = arith.mulf %46, %47 : vector<8x8xf32>
    %49 = vector.broadcast %17 : vector<1x8xf32> to vector<8x8xf32>
    %50 = arith.addf %48, %49 : vector<8x8xf32>
    %cst_19 = arith.constant dense<0xFF800000> : vector<8xf32>
    %51 = vector.multi_reduction <maximumf>, %50, %cst_19 [1] : vector<8x8xf32> to vector<8xf32>
    %52 = vector.shape_cast %51 : vector<8xf32> to vector<8x1xf32>
    %53 = vector.broadcast %52 : vector<8x1xf32> to vector<8x8xf32>
    %54 = arith.subf %50, %53 : vector<8x8xf32>
    %55 = math.exp %54 : vector<8x8xf32>
    %cst_20 = arith.constant dense<0.000000e+00> : vector<8xf32>
    %56 = vector.multi_reduction <add>, %55, %cst_20 [1] : vector<8x8xf32> to vector<8xf32>
    %57 = vector.shape_cast %56 : vector<8xf32> to vector<8x1xf32>
    %58 = tpu.reciprocal %57 {approx = true} : vector<8x1xf32> -> vector<8x1xf32>
    %59 = vector.broadcast %58 : vector<8x1xf32> to vector<8x8xf32>
    %60 = arith.mulf %55, %59 : vector<8x8xf32>
    %61 = arith.truncf %60 : vector<8x8xf32> to vector<8x8xbf16>
    %62 = arith.truncf %43 : vector<8x16xf32> to vector<8x16xbf16>
    %cst_21 = arith.constant dense<0.000000e+00> : vector<8x16xf32>
    %63 = tpu.matmul %61, %62, %cst_21 {dimension_numbers = #tpu.dot_dimension_numbers<[1], [0], [0], [1], [0, 0, 1, 1], [], []>} : vector<8x8xbf16>, vector<8x16xbf16>, vector<8x16xf32> -> vector<8x16xf32>
    %64 = tpu.concatenate %40, %63 in 1 : vector<8x16xf32>, vector<8x16xf32> -> vector<8x32xf32>
    %65 = vector.extract_strided_slice %16 {offsets = [1, 0], sizes = [1, 8], strides = [1, 1]} : vector<2x8xf32> to vector<1x8xf32>
    %66 = vector.extract_strided_slice %11 {offsets = [8, 0], sizes = [8, 16], strides = [1, 1]} : vector<16x96xf32> to vector<8x16xf32>
    %67 = vector.extract_strided_slice %11 {offsets = [8, 32], sizes = [8, 16], strides = [1, 1]} : vector<16x96xf32> to vector<8x16xf32>
    %68 = vector.extract_strided_slice %11 {offsets = [8, 64], sizes = [8, 16], strides = [1, 1]} : vector<16x96xf32> to vector<8x16xf32>
    %69 = arith.truncf %66 : vector<8x16xf32> to vector<8x16xbf16>
    %70 = arith.truncf %67 : vector<8x16xf32> to vector<8x16xbf16>
    %cst_22 = arith.constant dense<0.000000e+00> : vector<8x8xf32>
    %71 = tpu.matmul %69, %70, %cst_22 {dimension_numbers = #tpu.dot_dimension_numbers<[1], [1], [0], [0], [0, 0, 1, 0], [], []>} : vector<8x16xbf16>, vector<8x16xbf16>, vector<8x8xf32> -> vector<8x8xf32>
    %cst_23 = arith.constant 2.500000e-01 : f32
    %72 = vector.broadcast %cst_23 : f32 to vector<8x8xf32>
    %73 = arith.mulf %71, %72 : vector<8x8xf32>
    %74 = vector.broadcast %65 : vector<1x8xf32> to vector<8x8xf32>
    %75 = arith.addf %73, %74 : vector<8x8xf32>
    %cst_24 = arith.constant dense<0xFF800000> : vector<8xf32>
    %76 = vector.multi_reduction <maximumf>, %75, %cst_24 [1] : vector<8x8xf32> to vector<8xf32>
    %77 = vector.shape_cast %76 : vector<8xf32> to vector<8x1xf32>
    %78 = vector.broadcast %77 : vector<8x1xf32> to vector<8x8xf32>
    %79 = arith.subf %75, %78 : vector<8x8xf32>
    %80 = math.exp %79 : vector<8x8xf32>
    %cst_25 = arith.constant dense<0.000000e+00> : vector<8xf32>
    %81 = vector.multi_reduction <add>, %80, %cst_25 [1] : vector<8x8xf32> to vector<8xf32>
    %82 = vector.shape_cast %81 : vector<8xf32> to vector<8x1xf32>
    %83 = tpu.reciprocal %82 {approx = true} : vector<8x1xf32> -> vector<8x1xf32>
    %84 = vector.broadcast %83 : vector<8x1xf32> to vector<8x8xf32>
    %85 = arith.mulf %80, %84 : vector<8x8xf32>
    %86 = arith.truncf %85 : vector<8x8xf32> to vector<8x8xbf16>
    %87 = arith.truncf %68 : vector<8x16xf32> to vector<8x16xbf16>
    %cst_26 = arith.constant dense<0.000000e+00> : vector<8x16xf32>
    %88 = tpu.matmul %86, %87, %cst_26 {dimension_numbers = #tpu.dot_dimension_numbers<[1], [0], [0], [1], [0, 0, 1, 1], [], []>} : vector<8x8xbf16>, vector<8x16xbf16>, vector<8x16xf32> -> vector<8x16xf32>
    %89 = vector.extract_strided_slice %11 {offsets = [8, 16], sizes = [8, 16], strides = [1, 1]} : vector<16x96xf32> to vector<8x16xf32>
    %90 = vector.extract_strided_slice %11 {offsets = [8, 48], sizes = [8, 16], strides = [1, 1]} : vector<16x96xf32> to vector<8x16xf32>
    %91 = vector.extract_strided_slice %11 {offsets = [8, 80], sizes = [8, 16], strides = [1, 1]} : vector<16x96xf32> to vector<8x16xf32>
    %92 = arith.truncf %89 : vector<8x16xf32> to vector<8x16xbf16>
    %93 = arith.truncf %90 : vector<8x16xf32> to vector<8x16xbf16>
    %cst_27 = arith.constant dense<0.000000e+00> : vector<8x8xf32>
    %94 = tpu.matmul %92, %93, %cst_27 {dimension_numbers = #tpu.dot_dimension_numbers<[1], [1], [0], [0], [0, 0, 1, 0], [], []>} : vector<8x16xbf16>, vector<8x16xbf16>, vector<8x8xf32> -> vector<8x8xf32>
    %cst_28 = arith.constant 2.500000e-01 : f32
    %95 = vector.broadcast %cst_28 : f32 to vector<8x8xf32>
    %96 = arith.mulf %94, %95 : vector<8x8xf32>
    %97 = vector.broadcast %65 : vector<1x8xf32> to vector<8x8xf32>
    %98 = arith.addf %96, %97 : vector<8x8xf32>
    %cst_29 = arith.constant dense<0xFF800000> : vector<8xf32>
    %99 = vector.multi_reduction <maximumf>, %98, %cst_29 [1] : vector<8x8xf32> to vector<8xf32>
    %100 = vector.shape_cast %99 : vector<8xf32> to vector<8x1xf32>
    %101 = vector.broadcast %100 : vector<8x1xf32> to vector<8x8xf32>
    %102 = arith.subf %98, %101 : vector<8x8xf32>
    %103 = math.exp %102 : vector<8x8xf32>
    %cst_30 = arith.constant dense<0.000000e+00> : vector<8xf32>
    %104 = vector.multi_reduction <add>, %103, %cst_30 [1] : vector<8x8xf32> to vector<8xf32>
    %105 = vector.shape_cast %104 : vector<8xf32> to vector<8x1xf32>
    %106 = tpu.reciprocal %105 {approx = true} : vector<8x1xf32> -> vector<8x1xf32>
    %107 = vector.broadcast %106 : vector<8x1xf32> to vector<8x8xf32>
    %108 = arith.mulf %103, %107 : vector<8x8xf32>
    %109 = arith.truncf %108 : vector<8x8xf32> to vector<8x8xbf16>
    %110 = arith.truncf %91 : vector<8x16xf32> to vector<8x16xbf16>
    %cst_31 = arith.constant dense<0.000000e+00> : vector<8x16xf32>
    %111 = tpu.matmul %109, %110, %cst_31 {dimension_numbers = #tpu.dot_dimension_numbers<[1], [0], [0], [1], [0, 0, 1, 1], [], []>} : vector<8x8xbf16>, vector<8x16xbf16>, vector<8x16xf32> -> vector<8x16xf32>
    %112 = tpu.concatenate %88, %111 in 1 : vector<8x16xf32>, vector<8x16xf32> -> vector<8x32xf32>
    %113 = tpu.concatenate %64, %112 in 0 : vector<8x32xf32>, vector<8x32xf32> -> vector<16x32xf32>
    %c0_32 = arith.constant 0 : index
    %c0_33 = arith.constant 0 : index
    %c0_34 = arith.constant 0 : index
    %114 = vector.load %arg7[%c0_32, %c0_33, %c0_34] : memref<1x32x32xbf16, #tpu.memory_space<vmem>>, vector<1x32x32xbf16>
    %115 = vector.shape_cast %114 : vector<1x32x32xbf16> to vector<32x32xbf16>
    %116 = arith.truncf %113 : vector<16x32xf32> to vector<16x32xbf16>
    %cst_35 = arith.constant dense<0.000000e+00> : vector<16x32xf32>
    %117 = tpu.matmul %116, %115, %cst_35 {dimension_numbers = #tpu.dot_dimension_numbers<[1], [0], [0], [1], [0, 0, 1, 1], [], []>} : vector<16x32xbf16>, vector<32x32xbf16>, vector<16x32xf32> -> vector<16x32xf32>
    %c0_36 = arith.constant 0 : index
    %c0_37 = arith.constant 0 : index
    %c0_38 = arith.constant 0 : index
    %118 = vector.load %arg8[%c0_36, %c0_37, %c0_38] : memref<1x1x32xf32, #tpu.memory_space<vmem>>, vector<1x1x32xf32>
    %119 = vector.shape_cast %118 : vector<1x1x32xf32> to vector<1x32xf32>
    %120 = vector.broadcast %119 : vector<1x32xf32> to vector<16x32xf32>
    %121 = arith.addf %117, %120 : vector<16x32xf32>
    %122 = arith.addf %121, %3 : vector<16x32xf32>
    %c0_39 = arith.constant 0 : index
    %c0_40 = arith.constant 0 : index
    %c0_41 = arith.constant 0 : index
    %123 = vector.load %arg9[%c0_39, %c0_40, %c0_41] : memref<1x1x32xf32, #tpu.memory_space<vmem>>, vector<1x1x32xf32>
    %124 = vector.shape_cast %123 : vector<1x1x32xf32> to vector<1x32xf32>
    %c0_42 = arith.constant 0 : index
    %c0_43 = arith.constant 0 : index
    %c0_44 = arith.constant 0 : index
    %125 = vector.load %arg10[%c0_42, %c0_43, %c0_44] : memref<1x1x32xf32, #tpu.memory_space<vmem>>, vector<1x1x32xf32>
    %126 = vector.shape_cast %125 : vector<1x1x32xf32> to vector<1x32xf32>
    %cst_45 = arith.constant dense<0.000000e+00> : vector<16xf32>
    %127 = vector.multi_reduction <add>, %122, %cst_45 [1] : vector<16x32xf32> to vector<16xf32>
    %128 = vector.shape_cast %127 : vector<16xf32> to vector<16x1xf32>
    %cst_46 = arith.constant 3.200000e+01 : f32
    %129 = vector.broadcast %cst_46 : f32 to vector<16x1xf32>
    %130 = arith.divf %128, %129 : vector<16x1xf32>
    %131 = vector.broadcast %130 : vector<16x1xf32> to vector<16x32xf32>
    %132 = arith.subf %122, %131 : vector<16x32xf32>
    %133 = arith.mulf %132, %132 : vector<16x32xf32>
    %cst_47 = arith.constant dense<0.000000e+00> : vector<16xf32>
    %134 = vector.multi_reduction <add>, %133, %cst_47 [1] : vector<16x32xf32> to vector<16xf32>
    %135 = vector.shape_cast %134 : vector<16xf32> to vector<16x1xf32>
    %cst_48 = arith.constant 3.200000e+01 : f32
    %136 = vector.broadcast %cst_48 : f32 to vector<16x1xf32>
    %137 = arith.divf %135, %136 : vector<16x1xf32>
    %138 = vector.broadcast %130 : vector<16x1xf32> to vector<16x32xf32>
    %139 = arith.subf %122, %138 : vector<16x32xf32>
    %cst_49 = arith.constant 9.99999996E-13 : f32
    %140 = vector.broadcast %cst_49 : f32 to vector<16x1xf32>
    %141 = arith.addf %137, %140 : vector<16x1xf32>
    %142 = math.rsqrt %141 : vector<16x1xf32>
    %143 = vector.broadcast %142 : vector<16x1xf32> to vector<16x32xf32>
    %144 = arith.mulf %139, %143 : vector<16x32xf32>
    %145 = vector.broadcast %124 : vector<1x32xf32> to vector<16x32xf32>
    %146 = arith.mulf %144, %145 : vector<16x32xf32>
    %147 = vector.broadcast %126 : vector<1x32xf32> to vector<16x32xf32>
    %148 = arith.addf %146, %147 : vector<16x32xf32>
    %c0_50 = arith.constant 0 : index
    %c0_51 = arith.constant 0 : index
    %c0_52 = arith.constant 0 : index
    %149 = vector.load %arg11[%c0_50, %c0_51, %c0_52] : memref<1x32x64xbf16, #tpu.memory_space<vmem>>, vector<1x32x64xbf16>
    %150 = vector.shape_cast %149 : vector<1x32x64xbf16> to vector<32x64xbf16>
    %151 = arith.truncf %148 : vector<16x32xf32> to vector<16x32xbf16>
    %cst_53 = arith.constant dense<0.000000e+00> : vector<16x64xf32>
    %152 = tpu.matmul %151, %150, %cst_53 {dimension_numbers = #tpu.dot_dimension_numbers<[1], [0], [0], [1], [0, 0, 1, 1], [], []>} : vector<16x32xbf16>, vector<32x64xbf16>, vector<16x64xf32> -> vector<16x64xf32>
    %c0_54 = arith.constant 0 : index
    %c0_55 = arith.constant 0 : index
    %c0_56 = arith.constant 0 : index
    %153 = vector.load %arg12[%c0_54, %c0_55, %c0_56] : memref<1x1x64xf32, #tpu.memory_space<vmem>>, vector<1x1x64xf32>
    %154 = vector.shape_cast %153 : vector<1x1x64xf32> to vector<1x64xf32>
    %155 = vector.broadcast %154 : vector<1x64xf32> to vector<16x64xf32>
    %156 = arith.addf %152, %155 : vector<16x64xf32>
    %cst_57 = arith.constant 5.000000e-01 : f32
    %157 = vector.broadcast %cst_57 : f32 to vector<16x64xf32>
    %158 = arith.mulf %157, %156 : vector<16x64xf32>
    %cst_58 = arith.constant 0.707106769 : f32
    %159 = vector.broadcast %cst_58 : f32 to vector<16x64xf32>
    %160 = arith.mulf %156, %159 : vector<16x64xf32>
    %161 = math.erf %160 : vector<16x64xf32>
    %cst_59 = arith.constant 1.000000e+00 : f32
    %162 = vector.broadcast %cst_59 : f32 to vector<16x64xf32>
    %163 = arith.addf %162, %161 : vector<16x64xf32>
    %164 = arith.mulf %158, %163 : vector<16x64xf32>
    %c0_60 = arith.constant 0 : index
    %c0_61 = arith.constant 0 : index
    %c0_62 = arith.constant 0 : index
    %165 = vector.load %arg13[%c0_60, %c0_61, %c0_62] : memref<1x64x32xbf16, #tpu.memory_space<vmem>>, vector<1x64x32xbf16>
    %166 = vector.shape_cast %165 : vector<1x64x32xbf16> to vector<64x32xbf16>
    %167 = arith.truncf %164 : vector<16x64xf32> to vector<16x64xbf16>
    %cst_63 = arith.constant dense<0.000000e+00> : vector<16x32xf32>
    %168 = tpu.matmul %167, %166, %cst_63 {dimension_numbers = #tpu.dot_dimension_numbers<[1], [0], [0], [1], [0, 0, 1, 1], [], []>} : vector<16x64xbf16>, vector<64x32xbf16>, vector<16x32xf32> -> vector<16x32xf32>
    %c0_64 = arith.constant 0 : index
    %c0_65 = arith.constant 0 : index
    %c0_66 = arith.constant 0 : index
    %169 = vector.load %arg14[%c0_64, %c0_65, %c0_66] : memref<1x1x32xf32, #tpu.memory_space<vmem>>, vector<1x1x32xf32>
    %170 = vector.shape_cast %169 : vector<1x1x32xf32> to vector<1x32xf32>
    %171 = vector.broadcast %170 : vector<1x32xf32> to vector<16x32xf32>
    %172 = arith.addf %168, %171 : vector<16x32xf32>
    %173 = arith.addf %172, %148 : vector<16x32xf32>
    %c0_67 = arith.constant 0 : index
    %c0_68 = arith.constant 0 : index
    %c0_69 = arith.constant 0 : index
    %174 = vector.load %arg15[%c0_67, %c0_68, %c0_69] : memref<1x1x32xf32, #tpu.memory_space<vmem>>, vector<1x1x32xf32>
    %175 = vector.shape_cast %174 : vector<1x1x32xf32> to vector<1x32xf32>
    %c0_70 = arith.constant 0 : index
    %c0_71 = arith.constant 0 : index
    %c0_72 = arith.constant 0 : index
    %176 = vector.load %arg16[%c0_70, %c0_71, %c0_72] : memref<1x1x32xf32, #tpu.memory_space<vmem>>, vector<1x1x32xf32>
    %177 = vector.shape_cast %176 : vector<1x1x32xf32> to vector<1x32xf32>
    %cst_73 = arith.constant dense<0.000000e+00> : vector<16xf32>
    %178 = vector.multi_reduction <add>, %173, %cst_73 [1] : vector<16x32xf32> to vector<16xf32>
    %179 = vector.shape_cast %178 : vector<16xf32> to vector<16x1xf32>
    %cst_74 = arith.constant 3.200000e+01 : f32
    %180 = vector.broadcast %cst_74 : f32 to vector<16x1xf32>
    %181 = arith.divf %179, %180 : vector<16x1xf32>
    %182 = vector.broadcast %181 : vector<16x1xf32> to vector<16x32xf32>
    %183 = arith.subf %173, %182 : vector<16x32xf32>
    %184 = arith.mulf %183, %183 : vector<16x32xf32>
    %cst_75 = arith.constant dense<0.000000e+00> : vector<16xf32>
    %185 = vector.multi_reduction <add>, %184, %cst_75 [1] : vector<16x32xf32> to vector<16xf32>
    %186 = vector.shape_cast %185 : vector<16xf32> to vector<16x1xf32>
    %cst_76 = arith.constant 3.200000e+01 : f32
    %187 = vector.broadcast %cst_76 : f32 to vector<16x1xf32>
    %188 = arith.divf %186, %187 : vector<16x1xf32>
    %189 = vector.broadcast %181 : vector<16x1xf32> to vector<16x32xf32>
    %190 = arith.subf %173, %189 : vector<16x32xf32>
    %cst_77 = arith.constant 9.99999996E-13 : f32
    %191 = vector.broadcast %cst_77 : f32 to vector<16x1xf32>
    %192 = arith.addf %188, %191 : vector<16x1xf32>
    %193 = math.rsqrt %192 : vector<16x1xf32>
    %194 = vector.broadcast %193 : vector<16x1xf32> to vector<16x32xf32>
    %195 = arith.mulf %190, %194 : vector<16x32xf32>
    %196 = vector.broadcast %175 : vector<1x32xf32> to vector<16x32xf32>
    %197 = arith.mulf %195, %196 : vector<16x32xf32>
    %198 = vector.broadcast %177 : vector<1x32xf32> to vector<16x32xf32>
    %199 = arith.addf %197, %198 : vector<16x32xf32>
    %c0_78 = arith.constant 0 : index
    %c0_79 = arith.constant 0 : index
    %200 = vector.load %arg18[%c0_78, %c0_79] : memref<16x32xf32, #tpu.memory_space<vmem>>, vector<16x32xf32>
    tpu.vector_store %arg18[%c0_78, %c0_79], %199 {strides = array<i32>} : memref<16x32xf32, #tpu.memory_space<vmem>>, vector<16x32xf32>,
    %c0_80 = arith.constant 0 : index
    %c0_81 = arith.constant 0 : index
    %201 = vector.load %arg17[%c0_80, %c0_81] : memref<16x32xf32, #tpu.memory_space<vmem>>, vector<16x32xf32>
    tpu.vector_store %arg17[%c0_80, %c0_81], %199 {strides = array<i32>} : memref<16x32xf32, #tpu.memory_space<vmem>>, vector<16x32xf32>,
    return
  }
  func.func @transform_0(%arg0: i32) -> (i32, i32) {
    %c0_i32 = arith.constant 0 : i32
    %c0_i32_0 = arith.constant 0 : i32
    %c0_i32_1 = arith.constant 0 : i32
    return %c0_i32, %c0_i32_0 : i32, i32
  }
  func.func @transform_1(%arg0: i32) -> (i32, i32) {
    %c0_i32 = arith.constant 0 : i32
    %c0_i32_0 = arith.constant 0 : i32
    %c0_i32_1 = arith.constant 0 : i32
    return %c0_i32, %c0_i32_0 : i32, i32
  }
  func.func @transform_2(%arg0: i32) -> (i32, i32) {
    %c0_i32 = arith.constant 0 : i32
    %c0_i32_0 = arith.constant 0 : i32
    %c0_i32_1 = arith.constant 0 : i32
    return %c0_i32, %c0_i32_0 : i32, i32
  }
  func.func @transform_3(%arg0: i32) -> (i32, i32) {
    %c0_i32 = arith.constant 0 : i32
    %c0_i32_0 = arith.constant 0 : i32
    %c0_i32_1 = arith.constant 0 : i32
    return %c0_i32, %c0_i32_0 : i32, i32
  }
  func.func @transform_4(%arg0: i32) -> (i32, i32, i32) {
    %c0_i32 = arith.constant 0 : i32
    %c0_i32_0 = arith.constant 0 : i32
    %c0_i32_1 = arith.constant 0 : i32
    return %arg0, %c0_i32, %c0_i32_0 : i32, i32, i32
  }
  func.func @transform_5(%arg0: i32) -> (i32, i32, i32) {
    %c0_i32 = arith.constant 0 : i32
    %c0_i32_0 = arith.constant 0 : i32
    %c0_i32_1 = arith.constant 0 : i32
    return %arg0, %c0_i32, %c0_i32_0 : i32, i32, i32
  }
  func.func @transform_6(%arg0: i32) -> (i32, i32, i32) {
    %c0_i32 = arith.constant 0 : i32
    %c0_i32_0 = arith.constant 0 : i32
    %c0_i32_1 = arith.constant 0 : i32
    return %arg0, %c0_i32, %c0_i32_0 : i32, i32, i32
  }
  func.func @transform_7(%arg0: i32) -> (i32, i32, i32) {
    %c0_i32 = arith.constant 0 : i32
    %c0_i32_0 = arith.constant 0 : i32
    %c0_i32_1 = arith.constant 0 : i32
    return %arg0, %c0_i32, %c0_i32_0 : i32, i32, i32
  }
  func.func @transform_8(%arg0: i32) -> (i32, i32, i32) {
    %c0_i32 = arith.constant 0 : i32
    %c0_i32_0 = arith.constant 0 : i32
    %c0_i32_1 = arith.constant 0 : i32
    return %arg0, %c0_i32, %c0_i32_0 : i32, i32, i32
  }
  func.func @transform_9(%arg0: i32) -> (i32, i32, i32) {
    %c0_i32 = arith.constant 0 : i32
    %c0_i32_0 = arith.constant 0 : i32
    %c0_i32_1 = arith.constant 0 : i32
    return %arg0, %c0_i32, %c0_i32_0 : i32, i32, i32
  }
  func.func @transform_10(%arg0: i32) -> (i32, i32, i32) {
    %c0_i32 = arith.constant 0 : i32
    %c0_i32_0 = arith.constant 0 : i32
    %c0_i32_1 = arith.constant 0 : i32
    return %arg0, %c0_i32, %c0_i32_0 : i32, i32, i32
  }
  func.func @transform_11(%arg0: i32) -> (i32, i32, i32) {
    %c0_i32 = arith.constant 0 : i32
    %c0_i32_0 = arith.constant 0 : i32
    %c0_i32_1 = arith.constant 0 : i32
    return %arg0, %c0_i32, %c0_i32_0 : i32, i32, i32
  }
  func.func @transform_12(%arg0: i32) -> (i32, i32, i32) {
    %c0_i32 = arith.constant 0 : i32
    %c0_i32_0 = arith.constant 0 : i32
    %c0_i32_1 = arith.constant 0 : i32
    return %arg0, %c0_i32, %c0_i32_0 : i32, i32, i32
  }
  func.func @transform_13(%arg0: i32) -> (i32, i32, i32) {
    %c0_i32 = arith.constant 0 : i32
    %c0_i32_0 = arith.constant 0 : i32
    %c0_i32_1 = arith.constant 0 : i32
    return %arg0, %c0_i32, %c0_i32_0 : i32, i32, i32
  }
  func.func @transform_14(%arg0: i32) -> (i32, i32, i32) {
    %c0_i32 = arith.constant 0 : i32
    %c0_i32_0 = arith.constant 0 : i32
    %c0_i32_1 = arith.constant 0 : i32
    return %arg0, %c0_i32, %c0_i32_0 : i32, i32, i32
  }
  func.func @transform_15(%arg0: i32) -> (i32, i32, i32) {
    %c0_i32 = arith.constant 0 : i32
    %c0_i32_0 = arith.constant 0 : i32
    %c0_i32_1 = arith.constant 0 : i32
    return %arg0, %c0_i32, %c0_i32_0 : i32, i32, i32
  }
  func.func @transform_16(%arg0: i32) -> (i32, i32) {
    %c0_i32 = arith.constant 0 : i32
    %c0_i32_0 = arith.constant 0 : i32
    %c0_i32_1 = arith.constant 0 : i32
    return %c0_i32, %c0_i32_0 : i32, i32
  }
}

</mosaic_0001>

<bundles_post_ra>
// kernel: tpu_custom_call.1
= control target key start
LH: loop header
LB: loop body
LE: loop exit
PB: predicated region body
PF: predicated region fallthrough
CT: control target
= control target key end

     0   :  { %s2619_s0 = inlined_call_operand.hbm [shape: f32[16,32], index: 0, kind: input, shape index: {}]   ;;  %s2620_s1 = inlined_call_operand.vmem [shape: f32[2,8], index: 1, kind: input, shape index: {}]   ;;  %s2621_s2 = inlined_call_operand.vmem [shape: f32[1,32], index: 2, kind: input, shape index: {}]   ;;  %s2622_s3 = inlined_call_operand.hbm [shape: f32[1,32], index: 3, kind: input, shape index: {}]   ;;  %s2623_s4 = inlined_call_operand.vmem [shape: bf16[2,32,96], index: 4, kind: input, shape index: {}]   ;;  %s2624_s5 = inlined_call_operand.vmem [shape: f32[2,1,96], index: 5, kind: input, shape index: {}]   ;;  %s2625_s6 = inlined_call_operand.vmem [shape: bf16[2,32,32], index: 6, kind: input, shape index: {}]   ;;  %s2626_s7 = inlined_call_operand.vmem [shape: f32[2,1,32], index: 7, kind: input, shape index: {}]   ;;  %s2627_s8 = inlined_call_operand.vmem [shape: f32[2,1,32], index: 8, kind: input, shape index: {}]   ;;  %s2628_s9 = inlined_call_operand.vmem [shape: f32[2,1,32], index: 9, kind: input, shape index: {}]   ;;  %s2629_s10 = inlined_call_operand.vmem [shape: bf16[2,32,64], index: 10, kind: input, shape index: {}]   ;;  %s2630_s11 = inlined_call_operand.vmem [shape: f32[2,1,64], index: 11, kind: input, shape index: {}]   ;;  %s2631_s12 = inlined_call_operand.vmem [shape: bf16[2,64,32], index: 12, kind: input, shape index: {}]   ;;  %s2632_s13 = inlined_call_operand.vmem [shape: f32[2,1,32], index: 13, kind: input, shape index: {}]   ;;  %s2633_s14 = inlined_call_operand.vmem [shape: f32[2,1,32], index: 14, kind: input, shape index: {}]   ;;  %s2634_s15 = inlined_call_operand.vmem [shape: f32[2,1,32], index: 15, kind: input, shape index: {}]   ;;  %s2635_s16 = inlined_call_operand.hbm [shape: f32[16,32], index: 16, kind: output, shape index: {}]  }
   0x1   :  { %2643 = sst [smem:[#allocation14_spill]] %s2619_s0 }
   0x2   :  { %2644 = sst [smem:[#allocation15_spill]] %s2620_s1 }
   0x3   :  { %2645 = sst [smem:[#allocation16_spill]] %s2622_s3 }
   0x4   :  { %2646 = sst [smem:[#allocation17_spill]] %s2623_s4 }
   0x5   :  { %2647 = sst [smem:[#allocation18_spill]] %s2625_s6 }
   0x6   :  { %2648 = sst [smem:[#allocation19_spill]] %s2635_s16 }
   0x7   :  { %21 = vsyncpa [#allocation4], 0 }
   0x8   :  { %22 = vsyncpa [#allocation7], 0 }
   0x9   :  { %23 = vsyncpa [#allocation5], 0  ;;  %s2280_s21 = smov 0  }
   0xa LB: > { %2649 = sst [smem:[#allocation12_spill]] %s2178_s21  ;;  %s2286_s22 = sadd.s32 4294967295, %s2178_s21   ;;  %s2178_s21 = sphi %s2280_s21, %s29_s21  }
   0xb   : > { %p1813_p0 = scmp.ge.s32.totalorder %s2178_s21, 1  ;;  %p451_p1 = scmp.lt.s32.totalorder %s2178_s21, 3 }
   0xc   : > { %s2180_s23 = smov [#allocation3]   ;;  %p2637_p4 = scmp.eq.s32.totalorder %s2286_s22, 0 }
   0xd   : > { %s463_s24 = sshll.u32 %s2180_s23, 4  ;;  %p2291_p3 = pnand %p1813_p0, %p451_p1  ;;  %s464_s24 = int_to_ptr.vmem [resolvable:$true] %s463_s24 }
   0xe   : > { %s2181_s26 = smov [#allocation6]   ;;  %s2652_s0 = sld [smem:[#allocation14_spill]] }
   0xf   : > { %s2650_s25 = scalar_select %p2291_p3, 1, 0 }
  0x10   : > { %p1995_p5 = pneg %p2291_p3  ;;  %s483_s27 = sshll.u32 %s2181_s26, 4  ;;  %s2304_s27 = int_to_ptr.vmem [resolvable:$true] %s483_s27 }
  0x12   : > { %p2300_p6 = pnand %p2637_p4, %p1995_p5 }
  0x14   : > { %s2078_s17 = scalar_lea.hbm %s2652_s0, 256  ;;  %p2080_p8 = pneg %p2300_p6 }
  0x15   : > { %p2079_p7 = scmp.ne.s32.totalorder %s2652_s0, %s2078_s17  ;;  %p2085_p11 = scmp.lt.u32.totalorder %s2078_s17, %s2652_s0 }
  0x17   : > { %p2081_p9 = pnand %p2080_p8, %p2079_p7 }
  0x19   : > { %p2082_p10 = pneg %p2081_p9 }
  0x1b   : > { %p2087_p12 = pnand %p2085_p11, %p2082_p10 }
  0x1d   : > { %2090 = shalt.err (!%p2087_p12)
}
  0x1e   : > { %s2091_s26 = scalar_lea.vmem %s464_s24, 256  ;;  %p2099_p5 = scmp.lt.s32.totalorder %s464_s24, %s464_s24 }
  0x1f   : > { %p2092_p13 = scmp.ne.s32.totalorder %s464_s24, %s2091_s26  ;;  %p2100_p2 = scmp.lt.s32.totalorder %s2091_s26, %s2091_s26 }
  0x21   : > { %p2094_p0 = pnand %p2092_p13, %p2080_p8  ;;  %p2101_p4 = por %p2100_p2, %p2099_p5 }
  0x23   : > { %p2095_p1 = pneg %p2094_p0 }
  0x25   : > { %p2102_p3 = pnand %p2101_p4, %p2095_p1 }
  0x27   : > { %2105 = shalt.err (!%p2102_p3)
}
  0x28   : > { %s2182_s29 = smov 128   ;;  %s2183_s30 = smov 8  }
  0x29   : > { %1998 = dma.hbm_to_vmem [thread:$0]  (!%p2300_p6), %s2652_s0, 256, %s464_s24, [#allocation4], %s2182_s29, %s2182_s29, %s2183_s30  }
  0x2a   : > { %s2653_s3 = sld [smem:[#allocation16_spill]] }
  0x30   : > { %s2106_s23 = scalar_lea.hbm %s2653_s3, 16 }
  0x31   : > { %p2107_p7 = scmp.ne.s32.totalorder %s2653_s3, %s2106_s23  ;;  %p2113_p4 = scmp.lt.u32.totalorder %s2106_s23, %s2653_s3 }
  0x33   : > { %p2109_p2 = pnand %p2107_p7, %p2080_p8 }
  0x35   : > { %p2110_p3 = pneg %p2109_p2 }
  0x37   : > { %p2115_p9 = pnand %p2113_p4, %p2110_p3 }
  0x39   : > { %2118 = shalt.err (!%p2115_p9)
}
  0x3a   : > { %s2119_s24 = scalar_lea.vmem %s2304_s27, 16  ;;  %s2126_s16 = scalar_lea.vmem %s2304_s27, 32 }
  0x3b   : > { %p2120_p10 = scmp.ne.s32.totalorder %s2304_s27, %s2119_s24  ;;  %p2127_p13 = scmp.lt.s32.totalorder %s2304_s27, %s2304_s27 }
  0x3c   : > { %p2128_p0 = scmp.lt.s32.totalorder %s2126_s16, %s2119_s24 }
  0x3d   : > { %p2122_p11 = pnand %p2120_p10, %p2080_p8 }
  0x3e   : > { %p2129_p1 = por %p2128_p0, %p2127_p13 }
  0x3f   : > { %p2123_p12 = pneg %p2122_p11 }
  0x41   : > { %p2130_p5 = pnand %p2129_p1, %p2123_p12 }
  0x43   : > { %2133 = shalt.err (!%p2130_p5)
}
  0x44   : > { %2001 = dma.hbm_to_vmem [thread:$0]  (!%p2300_p6), %s2653_s3, 16, %s2304_s27, [#allocation7]  }
  0x45   : > { %p2654_p7 = scmp.ne.s32.totalorder %s2650_s25, 0 }
  0x47   : > { %576 = sbr.rel (%p2654_p7) target bundleno = 3003 (0xbbb), region = 84 }
  0x4e   : > { %p2655_p8 = scmp.eq.s32.totalorder %s2286_s22, 0 }
  0x50   : > { %2165 = dma.done.wait (%p2655_p8), [#allocation4], 256   ;;  %p2656_p2 = pmov %p2655_p8 }
  0x52   : > { %2167 = vsyncadd (%p2656_p2), [#allocation4], 4294967040  ;;  %p2657_p3 = pmov %p2656_p2 }
  0x53   : > { %p2658_p4 = pmov %p2656_p2 }
  0x54   : > { %2169 = dma.done.wait (%p2657_p3), [#allocation7], 16  }
  0x55   : > { %2171 = vsyncadd (%p2658_p4), [#allocation7], 4294967280  ;;  %p664_p9 = scmp.lt.s32.totalorder %s2286_s22, 1  ;;  %s2659_s4 = sld [smem:[#allocation17_spill]] }
  0x56   : > { %s2660_s6 = sld [smem:[#allocation18_spill]]  ;;  %p2662_p6 = scmp.ne.s32.totalorder %s2286_s22, 0 }
  0x57   : > { %s2366_s28 = scalar_select %p664_p9, %s2286_s22, 1 }
  0x58   : > { %712 = sbr.rel (%p2662_p6) target bundleno = 407 (0x197), region = 96  ;;  %v713_v0 = vld [vmem:[#allocation3] sm:$0xff] (!%p2662_p6)  ;;  %vm717_vm0 = vcmask (!%p2662_p6), 261120   ;;  %v714_v1 = vld [vmem:[#allocation3 + $0x8] sm:$0xff] (!%p2662_p6)  ;;  %v1829_v21 = vld [vmem:[%s2621_s2] ss:$0 sm:$0xff] (!%p2662_p6) }
  0x59   : > { %s1865_s25 = sshll.u32 %s2366_s28, 4  ;;  %s701_s27 = scalar_lea.vmem %s2632_s13, %s2366_s28  ;;  %v718_v2 = vsel (!%p2662_p6), %vm717_vm0, %v713_v0, 0.0  ;;  %v721_v3 = vsel (!%p2662_p6), %vm717_vm0, %v714_v1, 0.0  ;;  %v1830_v23 = vld [vmem:[#allocation6] ss:$0 sm:$0xff] (!%p2662_p6) }
  0x5a   : > { %s704_s17 = scalar_lea.vmem %s2633_s14, %s2366_s28  ;;  %s707_s3 = scalar_lea.vmem %s2634_s15, %s2366_s28  ;;  %719 = vadd.xlane.f32.xlu0 (!%p2662_p6), %v718_v2 }
  0x5b   : > { %s2376_s19 = scalar_lea.vmem %s2659_s4, %s1865_s25  ;;  %s2398_s4 = scalar_lea.vmem %s2629_s10, %s1865_s25 }
  0x5c   : > { %s2381_s26 = scalar_lea.vmem %s2660_s6, %s1865_s25  ;;  %s693_s6 = scalar_lea.vmem %s2630_s11, %s2366_s28 }
  0x5d   : > { %2661 = sst [smem:[#allocation13_spill]] %s2381_s26  ;;  %s1868_s26 = sshll.u32 %s2366_s28, 5 }
  0x5e   : > { %s2408_s1 = scalar_lea.vmem %s2631_s12, %s1868_s26  ;;  %722 = vadd.xlane.f32.xlu0 (!%p2662_p6), %v721_v3 }
  0xe7   : > { %v720_v4 = vpop.xlane.xlu0 %719 }
  0xe8   : > { %v725_v5 = vmul.f32 0.03125, %v720_v4 }
  0xea   : > { %v727_v6 = vsub.f32 %v713_v0, %v725_v5 }
  0xeb   : > { %v723_v7 = vpop.xlane.xlu0 %722 }
  0xec   : > { %v726_v8 = vmul.f32 0.03125, %v723_v7  ;;  %v729_v9 = vmul.f32 %v727_v6, %v727_v6 }
  0xee   : > { %v728_v10 = vsub.f32 %v714_v1, %v726_v8  ;;  %v731_v11 = vsel %vm717_vm0, %v729_v9, 0.0 }
  0xef   : > { %732 = vadd.xlane.f32.xlu1 %v731_v11 }
  0xf0   : > { %v730_v12 = vmul.f32 %v728_v10, %v728_v10 }
  0xf2   : > { %v734_v13 = vsel %vm717_vm0, %v730_v12, 0.0 }
  0xf3   : > { %735 = vadd.xlane.f32.xlu1 %v734_v13 }
 0x17c   : > { %v733_v14 = vpop.xlane.xlu1 %732 }
 0x17d   : > { %v737_v15 = vmul.f32 0.03125, %v733_v14 }
 0x17f   : > { %v739_v16 = vadd.f32 1e-12, %v737_v15 }
 0x180   : > { %v736_v17 = vpop.xlane.xlu1 %735 }
 0x181   : > { %2031 = vrsqrt.f32 %v739_v16  ;;  %v738_v18 = vmul.f32 0.03125, %v736_v17 }
 0x183   : > { %v740_v19 = vadd.f32 1e-12, %v738_v18 }
 0x185   : > { %2033 = vrsqrt.f32 %v740_v19 }
 0x18b   : > { %v2032_v20 = vpop.eup %2031 }
 0x18c   : > { %v743_v22 = vmul.f32 %v2032_v20, %v727_v6 }
 0x18e   : > { %v751_v24 = vmul.f32 %v1829_v21, %v743_v22 }
 0x18f   : > { %v2034_v25 = vpop.eup %2033 }
 0x190   : > { %v759_v26 = vadd.f32 %v1830_v23, %v751_v24  ;;  %v744_v27 = vmul.f32 %v2034_v25, %v728_v10 }
 0x192   : > { %761 = vst.msk [vmem:[#allocation2] sm:$0xff] %vm717_vm0, %v759_v26  ;;  %v752_v28 = vmul.f32 %v1829_v21, %v744_v27 }
 0x194   : > { %v760_v29 = vadd.f32 %v1830_v23, %v752_v28 }
 0x196   : > { %762 = vst.msk [vmem:[#allocation2 + $0x8] sm:$0xff] %vm717_vm0, %v760_v29 }
 0x197 PF: > { %v2040_v30 = vld [vmem:[%s2376_s19] sm:$0xff]   ;;  %v2184_v31 = vmov 0.0   ;;  %v2041_v32 = vld [vmem:[%s2376_s19 + $0x8] sm:$0xff]   ;;  %vm2185_vm1 = vmmov 0   ;;  %vm789_vm2 = vcmask 261120   ;;  %s2663_s23 = scalar_lea.vmem %s2624_s5, %s2366_s28  ;;  %s2186_s24 = smov 112   ;;  %v889_v55 = vlaneseq }
 0x198   : > { %1899 = vmatprep.subr.bf16.mxu0 %v2184_v31  ;;  %1907 = vmatprep.subr.bf16.mxu1 %v2184_v31  ;;  %v1831_v36 = vld [vmem:[%s2663_s23] ss:$0 sm:$0xff]  ;;  %s2187_s16 = smov 96   ;;  %s2188_s0 = smov 80   ;;  %vm841_vm3 = vcmask 130048   ;;  %vm894_vm4 = vcmask 64512  }
 0x199   : > { %1900 = vmatpush3.bf16.msra.mxu0 %v2040_v30  ;;  %1903 = vmatprep.mubr.msk.bf16.mxu0 %vm2185_vm1, %v2184_v31  ;;  %v2439_v33 = vld [vmem:[#allocation2] sm:$0xff]  ;;  %s2664_s25 = sld [smem:[#allocation15_spill]]  ;;  %v890_v58 = vshrl.u32 %v889_v55, 7  ;;  %s2189_s18 = smov 64   ;;  %vm912_vm5 = vcmask 1043456   ;;  %vm1539_vm6 = vcmask 523264  }
 0x19a   : > { %1901 = vmatprep.subr.bf16.mxu0 %v2184_v31  ;;  %1909 = vmatprep.mubr.msk.bf16.mxu1 %vm2185_vm1, %v2184_v31  ;;  %s2190_s30 = smov 48   ;;  %s2665_s26 = sld [smem:[#allocation13_spill]] }
 0x19b   : > { %v891_v60 = vsub.s32 0, %v890_v58  ;;  %v1126_v11 = vsub.s32 1, %v890_v58  ;;  %s2191_s19 = smov 16   ;;  %s2667_s21 = scalar_lea.vmem %s2627_s8, %s2366_s28 }
 0x19c   : > { %s2192_s23 = smov [#allocation8]   ;;  %p2006_p10 = scmp.eq.s32.totalorder %s2286_s22, 1 }
 0x19d   : > { %v2441_v34 = vld [vmem:[#allocation2 + $0x8] sm:$0xff]  ;;  %1902 = vmatpush3.bf16.msra.mxu0 %v2041_v32 }
 0x19e   : > { %v769_v35 = vpack.c.bf16 %v2441_v34, %v2439_v33  ;;  %1913 = vmatprep.subr.bf16.mxu0 %v2184_v31 }
 0x19f   : > { %v834_v56 = vld [vmem:[%s2664_s25] sm:$0x3]  ;;  %s2668_s25 = scalar_lea.vmem %s2628_s9, %s2366_s28 }
 0x1a0   : > { %1904 = vmatmul.mubr.msk.bf16.vlgmr.msra.gmra.mrb[0].mxu0 %vm789_vm2, %v769_v35  ;;  %v835_v57 = vsub.f32 1.0, %v834_v56 }
 0x1a1   : > { %1915 = vmatprep.mubr.msk.bf16.mxu0 %vm2185_vm1, %v2184_v31 }
 0x1a2   : > { %v836_v59 = vmul.f32 -10000.0, %v835_v57 }
 0x1a4   : > { %v892_v61 = vrot.slane %v836_v59, %v891_v60  ;;  %v1127_v13 = vrot.slane %v836_v59, %v1126_v11  ;;  %v2042_v11 = vld [vmem:[%s2665_s26] sm:$0xff]  }
 0x273   : > { %v827_v37 = vpop.f32.mrb[0].mxu0 }
 0x274   : > { %v828_v38 = vadd.f32 %v1831_v36, %v827_v37  ;;  %v1905_v39 = vpop.f32.mrb[1].mxu0 }
 0x275   : > { %v830_v40 = vpop.f32.mrb[2].mxu0 }
 0x276   : > { %v2457_v41 = vpack.c.bf16 %v828_v38, %v828_v38  ;;  %v831_v42 = vadd.f32 %v1831_v36, %v830_v40  ;;  %v1906_v43 = vpop.f32.mrb[3].mxu0 }
 0x278   : > { %956 = vrot.lane.b32.xlu1 %v2457_v41, %s2186_s24  ;;  %839 = vrot.lane.b32.xlu0 %v2457_v41, %s2187_s16  ;;  %v2461_v44 = vpack.c.bf16 %v831_v42, %v831_v42 }
 0x27c   : > { %958 = vrot.lane.b32.xlu0 %v2457_v41, %s2188_s0  ;;  %1075 = vrot.lane.b32.xlu1 %v2461_v44, %s2187_s16 }
 0x280   : > { %1191 = vrot.lane.b32.xlu0 %v2461_v44, %s2188_s0  ;;  %1189 = vrot.lane.b32.xlu1 %v2461_v44, %s2186_s24  ;;  %s2666_s24 = scalar_lea.vmem %s2626_s7, %s2366_s28 }
 0x2ea   : > { %v840_v45 = vpop.permute.xlu0 %839  ;;  %v957_v48 = vpop.permute.xlu1 %956 }
 0x2eb   : > { %v846_v46 = vsel %vm841_vm3, %v840_v45, 0 }
 0x2ec   : > { %1908 = vmatpush3.bf16.xpose.msra.mxu1 %v846_v46 }
 0x2ed   : > { %1919 = vmatprep.subr.bf16.mxu1 %v2184_v31 }
 0x2ee   : > { %v959_v47 = vpop.permute.xlu0 %958  ;;  %v1076_v50 = vpop.permute.xlu1 %1075 }
 0x2ef   : > { %v964_v49 = vsel %vm841_vm3, %v959_v47, 0  ;;  %v1081_v51 = vsel %vm841_vm3, %v1076_v50, 0 }
 0x2f2   : > { %v1192_v52 = vpop.permute.xlu0 %1191  ;;  %v1190_v54 = vpop.permute.xlu1 %1189 }
 0x2f3   : > { %1910 = vmatmul.mubr.msk.bf16.vlgmr.msra.gmra.mrb[0].mxu1 %vm841_vm3, %v2457_v41  ;;  %v1197_v53 = vsel %vm841_vm3, %v1192_v52, 0 }
 0x2f4   : > { %1920 = vmatpush3.bf16.xpose.msra.mxu1 %v964_v49  ;;  %1921 = vmatprep.mubr.msk.bf16.mxu1 %vm2185_vm1, %v2184_v31 }
 0x2f5   : > { %1931 = vmatprep.subr.bf16.mxu1 %v2184_v31 }
 0x2fb   : > { %1922 = vmatmul.mubr.msk.bf16.vlgmr.msra.gmra.mrb[4].mxu1 %vm841_vm3, %v957_v48 }
 0x2fc   : > { %1932 = vmatpush3.bf16.xpose.msra.mxu1 %v1081_v51  ;;  %1933 = vmatprep.mubr.msk.bf16.mxu1 %vm2185_vm1, %v2184_v31 }
 0x2fd   : > { %1943 = vmatprep.subr.bf16.mxu1 %v2184_v31 }
 0x303   : > { %1934 = vmatmul.mubr.msk.bf16.vlgmr.msra.gmra.mrb[8].mxu1 %vm841_vm3, %v2461_v44 }
 0x304   : > { %1944 = vmatpush3.bf16.xpose.msra.mxu1 %v1197_v53  ;;  %1945 = vmatprep.mubr.msk.bf16.mxu1 %vm2185_vm1, %v2184_v31 }
 0x305   : > { %1955 = vmatprep.subr.bf16.mxu1 %v2184_v31 }
 0x30b   : > { %1946 = vmatmul.mubr.msk.bf16.vlgmr.msra.gmra.mrb[12].mxu1 %vm841_vm3, %v1190_v54 }
 0x30c   : > { %1959 = vmatprep.mubr.msk.bf16.mxu1 %vm2185_vm1, %v2184_v31  ;;  %1956 = vmatpush3.bf16.msra.mxu1 %v2042_v11 }
 0x30d   : > { %1957 = vmatprep.subr.bf16.mxu1 %v2184_v31 }
 0x3c6   : > { %v882_v62 = vpop.f32.mrb[0].mxu1 }
 0x3c7   : > { %v888_v63 = vmul.f32 0.25, %v882_v62  ;;  %v1911_v0 = vpop.f32.mrb[1].mxu1 }
 0x3c8   : > { %v885_v1 = vpop.f32.mrb[2].mxu1 }
 0x3c9   : > { %v1912_v2 = vpop.f32.mrb[3].mxu1  ;;  %v893_v3 = vadd.f32 %v892_v61, %v888_v63 }
 0x3cb   : > { %v895_v4 = vsel %vm894_vm4, %v893_v3, -inf }
 0x3cc   : > { %896 = vmax.xlane.f32.xlu0 %v895_v4 }
 0x3ce   : > { %v1000_v5 = vpop.f32.mrb[4].mxu1 }
 0x3cf   : > { %v1006_v6 = vmul.f32 0.25, %v1000_v5  ;;  %v1923_v7 = vpop.f32.mrb[5].mxu1 }
 0x3d0   : > { %v1003_v8 = vpop.f32.mrb[6].mxu1 }
 0x3d1   : > { %v1924_v9 = vpop.f32.mrb[7].mxu1  ;;  %v1007_v10 = vadd.f32 %v1006_v6, %v892_v61 }
 0x3d3   : > { %v1008_v12 = vsel %vm894_vm4, %v1007_v10, -inf }
 0x3d4   : > { %1009 = vmax.xlane.f32.xlu1 %v1008_v12 }
 0x3d6   : > { %v1117_v14 = vpop.f32.mrb[8].mxu1 }
 0x3d7   : > { %v1123_v15 = vmul.f32 0.25, %v1117_v14  ;;  %v1935_v16 = vpop.f32.mrb[9].mxu1 }
 0x3d8   : > { %v1120_v17 = vpop.f32.mrb[10].mxu1 }
 0x3d9   : > { %v1936_v18 = vpop.f32.mrb[11].mxu1  ;;  %v1128_v19 = vadd.f32 %v1127_v13, %v1123_v15 }
 0x3db   : > { %v1129_v20 = vsel %vm894_vm4, %v1128_v19, -inf }
 0x3dc   : > { %1130 = vmax.xlane.f32.xlu0 %v1129_v20  ;;  %v2043_v20 = vld [vmem:[%s2665_s26 + $0x8] sm:$0xff]  }
 0x3dd   : > { %1958 = vmatpush3.bf16.msra.mxu1 %v2043_v20 }
 0x3de   : > { %v1233_v21 = vpop.f32.mrb[12].mxu1  ;;  %1971 = vmatprep.subr.bf16.mxu1 %v2184_v31 }
 0x3df   : > { %v1239_v22 = vmul.f32 0.25, %v1233_v21  ;;  %v1947_v23 = vpop.f32.mrb[13].mxu1 }
 0x3e0   : > { %v1236_v24 = vpop.f32.mrb[14].mxu1 }
 0x3e1   : > { %v1948_v25 = vpop.f32.mrb[15].mxu1  ;;  %v1240_v26 = vadd.f32 %v1239_v22, %v1127_v13 }
 0x3e3   : > { %v1241_v27 = vsel %vm894_vm4, %v1240_v26, -inf }
 0x3e4   : > { %1242 = vmax.xlane.f32.xlu0 %v1241_v27 }
 0x459   : > { %v897_v28 = vpop.xlane.xlu0 %896 }
 0x45a   : > { %v898_v29 = vsub.f32 %v893_v3, %v897_v28 }
 0x45c   : > { %v899_v30 = vmul.f32 1.442695, %v898_v29 }
 0x45e   : > { %2050 = vpow2.f32 %v899_v30 }
 0x461   : > { %v1010_v32 = vpop.xlane.xlu1 %1009 }
 0x462   : > { %v1011_v35 = vsub.f32 %v1007_v10, %v1010_v32 }
 0x464   : > { %v1012_v36 = vmul.f32 1.442695, %v1011_v35 }
 0x466   : > { %2052 = vpow2.f32 %v1012_v36 }
 0x468   : > { %v2051_v37 = vpop.eup %2050 }
 0x469   : > { %v901_v38 = vsel %vm894_vm4, %v2051_v37, 0.0  ;;  %v1131_v39 = vpop.xlane.xlu0 %1130 }
 0x46a   : > { %902 = vadd.xlane.f32.xlu1 %v901_v38  ;;  %v1132_v49 = vsub.f32 %v1128_v19, %v1131_v39  ;;  %v1843_v39 = vld [vmem:[%s2666_s24] ss:$0 sm:$0xff]  ;;  %s1640_s24 = sshll.u32 %s2192_s23, 4  ;;  %s1641_s24 = int_to_ptr.vmem [resolvable:$true] %s1640_s24 }
 0x46b   : > { %s2134_s28 = scalar_lea.vmem %s1641_s24, 256  ;;  %p2141_p0 = scmp.lt.s32.totalorder %s1641_s24, %s1641_s24 }
 0x46c   : > { %v1133_v50 = vmul.f32 1.442695, %v1132_v49  ;;  %p2135_p11 = scmp.ne.s32.totalorder %s1641_s24, %s2134_s28  ;;  %p2142_p1 = scmp.lt.s32.totalorder %s2134_s28, %s2134_s28 }
 0x46e   : > { %p2136_p12 = pnand %p2135_p11, %p2006_p10  ;;  %p2143_p5 = por %p2142_p1, %p2141_p0 }
 0x470   : > { %v2053_v40 = vpop.eup %2052  ;;  %p2137_p13 = pneg %p2136_p12 }
 0x471   : > { %v1243_v42 = vpop.xlane.xlu0 %1242  ;;  %v1014_v43 = vsel %vm894_vm4, %v2053_v40, 0.0 }
 0x472   : > { %v1244_v45 = vsub.f32 %v1240_v26, %v1243_v42  ;;  %1015 = vadd.xlane.f32.xlu0 %v1014_v43  ;;  %p2144_p7 = pnand %p2143_p5, %p2137_p13 }
 0x474   : > { %v1245_v46 = vmul.f32 1.442695, %v1244_v45 }
 0x476   : > { %2054 = vpow2.f32 %v1245_v46 }
 0x477   : > { %2056 = vpow2.f32 %v1133_v50 }
 0x47b   : > { %907 = vrot.lane.b32.xlu1 %v2457_v41, %s2189_s18 }
 0x480   : > { %v2055_v47 = vpop.eup %2054 }
 0x481   : > { %v1247_v48 = vsel %vm894_vm4, %v2055_v47, 0.0  ;;  %v2057_v51 = vpop.eup %2056 }
 0x482   : > { %1248 = vadd.xlane.f32.xlu0 %v1247_v48  ;;  %v1135_v52 = vsel %vm894_vm4, %v2057_v51, 0.0 }
 0x498   : > { %1020 = vrot.lane.b32.xlu0 %v2457_v41, %s2190_s30 }
 0x49f   : > { %1136 = vadd.xlane.f32.xlu1 %v1135_v52 }
 0x4b0   : > { %1141 = vrot.lane.b32.xlu1 %v2461_v44, %s2189_s18 }
 0x4b4   : > { %1253 = vrot.lane.b32.xlu1 %v2461_v44, %s2190_s30 }
 0x4f7   : > { %v903_v53 = vpop.xlane.xlu1 %902 }
 0x4f8   : > { %2058 = vrcp.f32 %v903_v53 }
 0x4fb   : > { %v908_v54 = vpop.permute.xlu1 %907 }
 0x4fc   : > { %v914_v55 = vsel %vm912_vm5, %v908_v54, 0 }
 0x4fd   : > { %1914 = vmatpush3.bf16.msra.mxu0 %v914_v55 }
 0x4fe   : > { %1925 = vmatprep.subr.bf16.mxu0 %v2184_v31 }
 0x4ff   : > { %v1016_v57 = vpop.xlane.xlu0 %1015 }
 0x500   : > { %2060 = vrcp.f32 %v1016_v57 }
 0x502   : > { %v2059_v56 = vpop.eup %2058 }
 0x503   : > { %v905_v41 = vmul.f32 %v2059_v56, %v2051_v37 }
 0x505   : > { %v906_v58 = vpack.c.bf16 %v905_v41, %v905_v41 }
 0x507   : > { %1916 = vmatmul.mubr.msk.bf16.vlgmr.msra.gmra.mrb[4].mxu0 %vm894_vm4, %v906_v58 }
 0x508   : > { %1927 = vmatprep.mubr.msk.bf16.mxu0 %vm2185_vm1, %v2184_v31 }
 0x50a   : > { %v2061_v44 = vpop.eup %2060 }
 0x50b   : > { %v1018_v60 = vmul.f32 %v2061_v44, %v2053_v40 }
 0x50d   : > { %v1019_v63 = vpack.c.bf16 %v1018_v60, %v1018_v60 }
 0x50f   : > { %v1249_v59 = vpop.xlane.xlu0 %1248 }
 0x513   : > { %v1021_v61 = vpop.permute.xlu0 %1020 }
 0x514   : > { %v1026_v62 = vsel %vm912_vm5, %v1021_v61, 0 }
 0x515   : > { %1926 = vmatpush3.bf16.msra.mxu0 %v1026_v62 }
 0x516   : > { %1937 = vmatprep.subr.bf16.mxu0 %v2184_v31 }
 0x518   : > { %1928 = vmatmul.mubr.msk.bf16.vlgmr.msra.gmra.mrb[8].mxu0 %vm894_vm4, %v1019_v63 }
 0x519   : > { %1939 = vmatprep.mubr.msk.bf16.mxu0 %vm2185_vm1, %v2184_v31 }
 0x52c   : > { %v1137_v0 = vpop.xlane.xlu1 %1136 }
 0x52d   : > { %2062 = vrcp.f32 %v1137_v0 }
 0x52e   : > { %2064 = vrcp.f32 %v1249_v59  ;;  %v2045_v59 = vld [vmem:[%s2398_s4 + $0x8] sm:$0xff]  }
 0x530   : > { %v1142_v1 = vpop.permute.xlu1 %1141 }
 0x531   : > { %v1147_v2 = vsel %vm912_vm5, %v1142_v1, 0 }
 0x532   : > { %1938 = vmatpush3.bf16.msra.mxu0 %v1147_v2 }
 0x533   : > { %1949 = vmatprep.subr.bf16.mxu0 %v2184_v31 }
 0x534   : > { %v1254_v5 = vpop.permute.xlu1 %1253 }
 0x535   : > { %v1259_v8 = vsel %vm912_vm5, %v1254_v5, 0 }
 0x537   : > { %v2063_v3 = vpop.eup %2062 }
 0x538   : > { %v1139_v4 = vmul.f32 %v2063_v3, %v2057_v51  ;;  %v2065_v7 = vpop.eup %2064  ;;  %v1847_v3 = vld [vmem:[%s2667_s21] ss:$0 sm:$0xff] }
 0x539   : > { %v1251_v9 = vmul.f32 %v2065_v7, %v2055_v47 }
 0x53a   : > { %v1140_v6 = vpack.c.bf16 %v1139_v4, %v1139_v4 }
 0x53b   : > { %v1252_v10 = vpack.c.bf16 %v1251_v9, %v1251_v9 }
 0x53c   : > { %1940 = vmatmul.mubr.msk.bf16.vlgmr.msra.gmra.mrb[12].mxu0 %vm894_vm4, %v1140_v6 }
 0x53d   : > { %1950 = vmatpush3.bf16.msra.mxu0 %v1259_v8  ;;  %1951 = vmatprep.mubr.msk.bf16.mxu0 %vm2185_vm1, %v2184_v31  ;;  %v1848_v8 = vld [vmem:[%s2668_s25] ss:$0 sm:$0xff] }
 0x53e   : > { %1963 = vmatprep.subr.bf16.mxu0 %v2184_v31 }
 0x544   : > { %1952 = vmatmul.mubr.msk.bf16.vlgmr.msra.gmra.mrb[16].mxu0 %vm894_vm4, %v1252_v10 }
 0x545   : > { %1967 = vmatprep.mubr.msk.bf16.mxu0 %vm2185_vm1, %v2184_v31 }
 0x5da   : > { %v950_v12 = vpop.f32.mrb[4].mxu0 }
 0x5db   : > { %v1917_v13 = vpop.f32.mrb[5].mxu0 }
 0x5dc   : > { %v953_v14 = vpop.f32.mrb[6].mxu0  ;;  %v2046_v13 = vld [vmem:[%s2408_s1] sm:$0xff]  }
 0x5dd   : > { %v1918_v15 = vpop.f32.mrb[7].mxu0  ;;  %v2047_v14 = vld [vmem:[%s2408_s1 + $0x8] sm:$0xff]  }
 0x5de   : > { %v2048_v15 = vld [vmem:[%s2408_s1 + $0x10] sm:$0xff]  }
 0x5eb   : > { %v1062_v16 = vpop.f32.mrb[8].mxu0 }
 0x5ec   : > { %v1929_v17 = vpop.f32.mrb[9].mxu0 }
 0x5ed   : > { %v1065_v18 = vpop.f32.mrb[10].mxu0  ;;  %v1849_v17 = vld [vmem:[%s693_s6] ss:$0 sm:$0xff] }
 0x5ee   : > { %v1930_v19 = vpop.f32.mrb[11].mxu0 }
 0x60f   : > { %v1183_v21 = vpop.f32.mrb[12].mxu0 }
 0x610   : > { %v1941_v22 = vpop.f32.mrb[13].mxu0 }
 0x611   : > { %v1186_v23 = vpop.f32.mrb[14].mxu0 }
 0x612   : > { %v1942_v24 = vpop.f32.mrb[15].mxu0 }
 0x617   : > { %v1295_v25 = vpop.f32.mrb[16].mxu0 }
 0x618   : > { %v2035_v26 = vpack.i.bf16 %v1295_v25, %v1062_v16  ;;  %v1953_v27 = vpop.f32.mrb[17].mxu0  ;;  %v2049_v16 = vld [vmem:[%s2408_s1 + $0x18] sm:$0xff]  }
 0x619   : > { %v1298_v28 = vpop.f32.mrb[18].mxu0 }
 0x61a   : > { %2036 = vrot.lane.b32.xlu0 %v2035_v26, %s2191_s19  ;;  %v1954_v29 = vpop.f32.mrb[19].mxu0 }
 0x68c   : > { %v2037_v30 = vpop.permute.xlu0 %2036 }
 0x68d   : > { %v2039_v32 = vunpack.i.h.bf16 %v2037_v30  ;;  %v2038_v35 = vunpack.i.l.bf16 %v2037_v30 }
 0x68f   : > { %v1305_v36 = vsel %vm841_vm3, %v1183_v21, %v2039_v32  ;;  %v1072_v37 = vsel %vm841_vm3, %v950_v12, %v2038_v35 }
 0x690   : > { %v1310_v38 = vpack.c.bf16 %v1305_v36, %v1072_v37  ;;  %v1853_v37 = vld [vmem:[%s701_s27] ss:$0 sm:$0xff] }
 0x692   : > { %1960 = vmatmul.mubr.msk.bf16.vlgmr.msra.gmra.mrb[16].mxu1 %vm789_vm2, %v1310_v38 }
 0x693   : > { %1979 = vmatprep.mubr.msk.bf16.mxu1 %vm2185_vm1, %v2184_v31  ;;  %1972 = vmatpush3.bf16.msra.mxu1 %v2046_v13 }
 0x694   : > { %1973 = vmatprep.subr.bf16.mxu1 %v2184_v31 }
 0x697   : > { %1974 = vmatpush3.bf16.msra.mxu1 %v2047_v14 }
 0x698   : > { %1975 = vmatprep.subr.bf16.mxu1 %v2184_v31 }
 0x69b   : > { %1976 = vmatpush3.bf16.msra.mxu1 %v2048_v15 }
 0x69c   : > { %1977 = vmatprep.subr.bf16.mxu1 %v2184_v31 }
 0x69f   : > { %1978 = vmatpush3.bf16.msra.mxu1 %v2049_v16 }
 0x765   : > { %v1367_v40 = vpop.f32.mrb[16].mxu1 }
 0x766   : > { %v1368_v42 = vadd.f32 %v1843_v39, %v1367_v40  ;;  %v1961_v43 = vpop.f32.mrb[17].mxu1 }
 0x767   : > { %v1370_v45 = vpop.f32.mrb[18].mxu1 }
 0x768   : > { %v1371_v46 = vadd.f32 %v1843_v39, %v1370_v45  ;;  %v1962_v47 = vpop.f32.mrb[19].mxu1  ;;  %v1374_v48 = vadd.f32 %v1368_v42, %v2439_v33 }
 0x76a   : > { %v1378_v49 = vsel %vm789_vm2, %v1374_v48, 0.0  ;;  %v1375_v50 = vadd.f32 %v1371_v46, %v2441_v34  ;;  %v2044_v34 = vld [vmem:[%s2398_s4] sm:$0xff]  }
 0x76b   : > { %1379 = vadd.xlane.f32.xlu1 %v1378_v49  ;;  %1964 = vmatpush3.bf16.msra.mxu0 %v2044_v34 }
 0x76c   : > { %v1381_v51 = vsel %vm789_vm2, %v1375_v50, 0.0  ;;  %1965 = vmatprep.subr.bf16.mxu0 %v2184_v31 }
 0x76d   : > { %1382 = vadd.xlane.f32.xlu0 %v1381_v51 }
 0x76f   : > { %1966 = vmatpush3.bf16.msra.mxu0 %v2045_v59 }
 0x7f8   : > { %v1380_v52 = vpop.xlane.xlu1 %1379 }
 0x7f9   : > { %v1385_v53 = vmul.f32 0.03125, %v1380_v52 }
 0x7fa   : > { %v1383_v54 = vpop.xlane.xlu0 %1382 }
 0x7fb   : > { %v1387_v55 = vsub.f32 %v1374_v48, %v1385_v53  ;;  %v1386_v56 = vmul.f32 0.03125, %v1383_v54 }
 0x7fd   : > { %v1388_v57 = vsub.f32 %v1375_v50, %v1386_v56  ;;  %v1389_v41 = vmul.f32 %v1387_v55, %v1387_v55 }
 0x7ff   : > { %v1391_v58 = vsel %vm789_vm2, %v1389_v41, 0.0  ;;  %v1390_v33 = vmul.f32 %v1388_v57, %v1388_v57 }
 0x800   : > { %1392 = vadd.xlane.f32.xlu0 %v1391_v58 }
 0x801   : > { %v1394_v44 = vsel %vm789_vm2, %v1390_v33, 0.0 }
 0x802   : > { %1395 = vadd.xlane.f32.xlu1 %v1394_v44 }
 0x88d   : > { %v1393_v60 = vpop.xlane.xlu0 %1392 }
 0x88e   : > { %v1397_v61 = vmul.f32 0.03125, %v1393_v60 }
 0x88f   : > { %v1396_v62 = vpop.xlane.xlu1 %1395 }
 0x890   : > { %v1399_v63 = vadd.f32 1e-12, %v1397_v61  ;;  %v1398_v0 = vmul.f32 0.03125, %v1396_v62 }
 0x892   : > { %2066 = vrsqrt.f32 %v1399_v63  ;;  %v1400_v1 = vadd.f32 1e-12, %v1398_v0  ;;  %v1859_v63 = vld [vmem:[%s704_s17] ss:$0 sm:$0xff] }
 0x894   : > { %2068 = vrsqrt.f32 %v1400_v1 }
 0x89c   : > { %v2067_v2 = vpop.eup %2066 }
 0x89d   : > { %v1403_v4 = vmul.f32 %v2067_v2, %v1387_v55  ;;  %v1860_v2 = vld [vmem:[%s707_s3] ss:$0 sm:$0xff] }
 0x89e   : > { %v2069_v5 = vpop.eup %2068 }
 0x89f   : > { %v1411_v6 = vmul.f32 %v1847_v3, %v1403_v4  ;;  %v1404_v7 = vmul.f32 %v2069_v5, %v1388_v57 }
 0x8a1   : > { %v1412_v9 = vmul.f32 %v1847_v3, %v1404_v7  ;;  %v1419_v10 = vadd.f32 %v1848_v8, %v1411_v6 }
 0x8a3   : > { %v1420_v11 = vadd.f32 %v1848_v8, %v1412_v9 }
 0x8a5   : > { %v1425_v12 = vpack.c.bf16 %v1420_v11, %v1419_v10 }
 0x8a7   : > { %1968 = vmatmul.mubr.msk.bf16.vlgmr.msra.gmra.mrb[20].mxu0 %vm789_vm2, %v1425_v12 }
 0x97a   : > { %v1482_v18 = vpop.f32.mrb[20].mxu0 }
 0x97b   : > { %v1483_v19 = vadd.f32 %v1849_v17, %v1482_v18  ;;  %v1969_v20 = vpop.f32.mrb[21].mxu0 }
 0x97c   : > { %v1485_v21 = vpop.f32.mrb[22].mxu0 }
 0x97d   : > { %v1491_v22 = vmul.f32 0.70710677, %v1483_v19  ;;  %v1486_v23 = vadd.f32 %v1849_v17, %v1485_v21  ;;  %v1970_v24 = vpop.f32.mrb[23].mxu0  ;;  %v1489_v28 = vmul.f32 0.5, %v1483_v19 }
 0x97f   : > { %2070 = verf.f32 %v1491_v22  ;;  %v1492_v25 = vmul.f32 0.70710677, %v1486_v23  ;;  %v1490_v29 = vmul.f32 0.5, %v1486_v23 }
 0x981   : > { %2072 = verf.f32 %v1492_v25 }
 0x989   : > { %v2071_v26 = vpop.eup %2070 }
 0x98a   : > { %v1495_v31 = vadd.f32 1.0, %v2071_v26 }
 0x98b   : > { %v2073_v27 = vpop.eup %2072 }
 0x98c   : > { %v1496_v30 = vadd.f32 1.0, %v2073_v27  ;;  %v1497_v32 = vmul.f32 %v1495_v31, %v1489_v28 }
 0x98e   : > { %v1498_v35 = vmul.f32 %v1496_v30, %v1490_v29 }
 0x990   : > { %v1507_v36 = vpack.c.bf16 %v1498_v35, %v1497_v32 }
 0x992   : > { %1980 = vmatmul.mubr.msk.bf16.vlgmr.msra.gmra.mrb[20].mxu1 %vm1539_vm6, %v1507_v36 }
 0xa65   : > { %v1577_v38 = vpop.f32.mrb[20].mxu1 }
 0xa66   : > { %v1578_v39 = vadd.f32 %v1853_v37, %v1577_v38  ;;  %v1981_v40 = vpop.f32.mrb[21].mxu1 }
 0xa67   : > { %v1580_v42 = vpop.f32.mrb[22].mxu1 }
 0xa68   : > { %v1581_v43 = vadd.f32 %v1853_v37, %v1580_v42  ;;  %v1982_v45 = vpop.f32.mrb[23].mxu1  ;;  %v1584_v46 = vadd.f32 %v1578_v39, %v1419_v10 }
 0xa6a   : > { %v1588_v47 = vsel %vm789_vm2, %v1584_v46, 0.0  ;;  %v1585_v48 = vadd.f32 %v1581_v43, %v1420_v11 }
 0xa6b   : > { %1589 = vadd.xlane.f32.xlu0 %v1588_v47 }
 0xa6c   : > { %v1591_v49 = vsel %vm789_vm2, %v1585_v48, 0.0 }
 0xa6d   : > { %1592 = vadd.xlane.f32.xlu1 %v1591_v49 }
 0xaf8   : > { %v1590_v50 = vpop.xlane.xlu0 %1589 }
 0xaf9   : > { %v1594_v51 = vmul.f32 0.03125, %v1590_v50 }
 0xafa   : > { %v1593_v52 = vpop.xlane.xlu1 %1592 }
 0xafb   : > { %v1596_v53 = vsub.f32 %v1584_v46, %v1594_v51  ;;  %v1595_v54 = vmul.f32 0.03125, %v1593_v52 }
 0xafd   : > { %v1597_v55 = vsub.f32 %v1585_v48, %v1595_v54  ;;  %v1598_v56 = vmul.f32 %v1596_v53, %v1596_v53 }
 0xaff   : > { %v1600_v57 = vsel %vm789_vm2, %v1598_v56, 0.0  ;;  %v1599_v41 = vmul.f32 %v1597_v55, %v1597_v55 }
 0xb00   : > { %1601 = vadd.xlane.f32.xlu0 %v1600_v57 }
 0xb01   : > { %v1603_v58 = vsel %vm789_vm2, %v1599_v41, 0.0 }
 0xb02   : > { %1604 = vadd.xlane.f32.xlu1 %v1603_v58 }
 0xb8d   : > { %v1602_v33 = vpop.xlane.xlu0 %1601 }
 0xb8e   : > { %v1606_v44 = vmul.f32 0.03125, %v1602_v33 }
 0xb8f   : > { %v1605_v34 = vpop.xlane.xlu1 %1604 }
 0xb90   : > { %v1608_v59 = vadd.f32 1e-12, %v1606_v44  ;;  %v1607_v60 = vmul.f32 0.03125, %v1605_v34 }
 0xb92   : > { %2074 = vrsqrt.f32 %v1608_v59  ;;  %v1609_v61 = vadd.f32 1e-12, %v1607_v60 }
 0xb94   : > { %2076 = vrsqrt.f32 %v1609_v61 }
 0xb9c   : > { %v2075_v62 = vpop.eup %2074 }
 0xb9d   : > { %v1612_v0 = vmul.f32 %v2075_v62, %v1596_v53 }
 0xb9e   : > { %v2077_v1 = vpop.eup %2076 }
 0xb9f   : > { %v1613_v3 = vmul.f32 %v2077_v1, %v1597_v55  ;;  %v1620_v4 = vmul.f32 %v1859_v63, %v1612_v0 }
 0xba1   : > { %v1621_v5 = vmul.f32 %v1859_v63, %v1613_v3  ;;  %v1628_v6 = vadd.f32 %v1860_v2, %v1620_v4 }
 0xba3   : > { %v1629_v7 = vadd.f32 %v1860_v2, %v1621_v5  ;;  %1630 = vst.msk [vmem:[#allocation2] sm:$0xff] %vm789_vm2, %v1628_v6  ;;  %1632 = vst.msk [vmem:[#allocation8] sm:$0xff] %vm789_vm2, %v1628_v6 }
 0xba5   : > { %1631 = vst.msk [vmem:[#allocation2 + $0x8] sm:$0xff] %vm789_vm2, %v1629_v7  ;;  %1633 = vst.msk [vmem:[#allocation8 + $0x8] sm:$0xff] %vm789_vm2, %v1629_v7 }
 0xba6   : > { %2147 = shalt.err (!%p2144_p7)
}
 0xba7   : > { %s2669_s16 = sld [smem:[#allocation19_spill]] }
 0xbad   : > { %s2148_s0 = scalar_lea.hbm %s2669_s16, 256 }
 0xbae   : > { %p2149_p8 = scmp.ne.s32.totalorder %s2669_s16, %s2148_s0  ;;  %p2154_p4 = scmp.lt.u32.totalorder %s2148_s0, %s2669_s16 }
 0xbb0   : > { %p2150_p2 = pnand %p2149_p8, %p2006_p10 }
 0xbb2   : > { %p2151_p3 = pneg %p2150_p2 }
 0xbb4   : > { %p2156_p9 = pnand %p2154_p4, %p2151_p3 }
 0xbb6   : > { %2159 = shalt.err (!%p2156_p9)
}
 0xbb7   : > { %s2193_s18 = smov 128   ;;  %s2194_s30 = smov 8  }
 0xbb8   : > { %1992 = dma.vmem_to_hbm [thread:$0]  (%p2006_p10), %s1641_s24, 256, %s2669_s16, [#allocation5], %s2193_s18, %s2193_s18, %s2194_s30  }
 0xbb9   : > { %2173 = dma.done.wait (%p2006_p10), [#allocation5], 256  }
 0xbba   : > { %2175 = vsyncadd (%p2006_p10), [#allocation5], 4294967040 }
 0xbbb PF: > { %s2670_s27 = sld [smem:[#allocation12_spill]] }
 0xbc1   : > { %s29_s21 = sadd.s32 1, %s2670_s27  }
 0xbc2   : > { %p26_p6 = scmp.ge.s32.totalorder %s29_s21, 4  }
 0xbc4   :  { %28 = sbr.rel (!%p26_p6) target bundleno = 10 (0xa), region = 157 }
 0xbcb   :  { %1656 = vsyncpa [#allocation4], 1 }
 0xbcc   :  { %1658 = vsyncpa [#allocation4 + $0x1], 1 }
 0xbcd   :  { %1659 = vsyncpa [#allocation7], 1 }
 0xbce   :  { %1660 = vsyncpa [#allocation5], 1 }
 0xbcf   :  { %1662 = vsyncpa [#allocation5 + $0x1], 1 }

</bundles_post_ra>
